<compile_context>
chip_gen: v7x
topology: tpu7x:2x2x1
jax: 0.10.0
libtpu: 0.0.40
codegen_flags: <defaults>
</compile_context>

<pallas_src>
import functools

import jax
import jax.numpy as jnp
from jax.experimental import pallas as pl
from jax.experimental.pallas import tpu as pltpu


def _smorl_enc_kernel(x_ref, wl_ref, wm_ref, wvx_ref, rrep_ref, ssum_ref,
                      bfly_ref, bias_ref, o_ref, *, n_slots):
    """One batch tile of the fused SMORL encoder forward pass.

    All arrays are flat 2-D with batch on sublanes:
      x_ref    (TB, F=n*(E+1))   raw input rows (feats + z_pres interleaved)
      wl_ref   (F, L*n)          slot-block-diag logit weight  -> logits[b, l*n+j]
      wm_ref   (F, L*n)          z_pres selector               -> pres[b, l*n+j]
      wvx_ref  (F, L*n*E)        slot-block-diag (Wv @ Wo), tiled over l
      rrep_ref (L*n, L*n*E)      0/1 replication of attn over the E channels
      ssum_ref (L*n*E, L*E)      0/1 segment-sum over the n slots
      bfly_ref (steps+1, G, G)   XOR-permutation matrices (group max) + group-sum
      bias_ref (1, L*E)          bv @ Wo + bo, tiled over l
      o_ref    (TB, L*E)

    Row-independence invariant: nothing below mixes different batch rows, so a
    partial (out-of-bounds) final batch tile only produces garbage in rows whose
    output writes Pallas masks away.
    """
    f32 = jnp.float32
    hi = jax.lax.Precision.HIGHEST
    xb = x_ref[...].astype(f32)                                         # (TB, F)

    logits = jnp.dot(xb, wl_ref[...], precision=hi,
                     preferred_element_type=f32)                        # (TB, L*n)
    pres = jnp.dot(xb, wm_ref[...], precision=hi,
                   preferred_element_type=f32)                          # (TB, L*n)
    logits = jnp.where(pres > 0.0, logits, -1e9)

    # Masked softmax over each aligned group of n_slots lanes (the slot axis).
    # Group max via an XOR butterfly built from exact 0/1 permutation matmuls:
    # stays vectorised over all batch rows, no per-row loops, no relayouts.
    steps = int(n_slots).bit_length() - 1
    gmax = logits
    for t in range(steps):
        part = jnp.dot(gmax, bfly_ref[t], precision=hi,
                       preferred_element_type=f32)
        gmax = jnp.maximum(gmax, part)
    p = jnp.exp(logits - gmax)
    den = jnp.dot(p, bfly_ref[steps], precision=hi,
                  preferred_element_type=f32)          # per-group sums, broadcast
    attn = p * pl.reciprocal(den, approx=True)                          # (TB, L*n)

    # Values already projected through Wv @ Wo (tiled over l); replicate the
    # attention weights over the E output channels, multiply, and segment-sum
    # over the slot axis -> lane-dense (TB, L*E) output.
    vexp = jnp.dot(xb, wvx_ref[...], precision=hi,
                   preferred_element_type=f32)                          # (TB, L*n*E)
    aexp = jnp.dot(attn, rrep_ref[...], precision=hi,
                   preferred_element_type=f32)                          # (TB, L*n*E)
    out = jnp.dot(aexp * vexp, ssum_ref[...], precision=hi,
                  preferred_element_type=f32) + bias_ref[...]           # (TB, L*E)
    o_ref[...] = out.astype(o_ref.dtype)


def _fold_params(query, wq, bq, wk, wv, bv, wo, bo, n, e):
    """Fold the D projection dim away and build the block-structured lane-flat
    weights used by the kernel.  Everything here is tiny (<=256x256)."""
    f32 = jnp.float32
    hi = jax.lax.Precision.HIGHEST
    L = query.shape[0]
    d = wq.shape[1]
    F = n * (e + 1)
    G = L * n

    q_proj = jnp.dot(query.astype(f32), wq.astype(f32), precision=hi) + bq.astype(f32)
    scale = 1.0 / float(d) ** 0.5
    # bk dropped on purpose: q . bk only shifts every logit of a softmax group
    # by the same constant, hence cancels exactly.
    a = scale * jnp.dot(wk.astype(f32), q_proj.T, precision=hi)         # (E, L)
    wvo = jnp.dot(wv.astype(f32), wo.astype(f32), precision=hi)         # (E, E)
    b_out = jnp.dot(bv.astype(f32), wo.astype(f32), precision=hi) + bo.astype(f32)

    eye_n = jnp.eye(n, dtype=f32)
    eye_l = jnp.eye(L, dtype=f32)
    eye_e = jnp.eye(e, dtype=f32)
    ones_l = jnp.ones((L,), f32)
    ones_e = jnp.ones((e,), f32)
    ones_n = jnp.ones((n,), f32)
    a_pad = jnp.concatenate([a, jnp.zeros((1, L), f32)], axis=0)        # (E+1, L)
    wvo_pad = jnp.concatenate([wvo, jnp.zeros((1, e), f32)], axis=0)    # (E+1, E)
    pres_sel = jnp.zeros((e + 1,), f32).at[e].set(1.0)

    # All einsums below are pure outer products (no contraction) -> exact.
    # x @ w_logit -> logits[b, l*n + j] = scale * (feats[b,j] @ Wk) . q_proj[l]
    w_logit = jnp.einsum('jk,dl->jdlk', eye_n, a_pad).reshape(F, G)
    # x @ w_mask  -> pres[b, l*n + j] = z_pres[b, j]
    w_mask = jnp.einsum('jk,d,l->jdlk', eye_n, pres_sel, ones_l).reshape(F, G)
    # x @ w_vexp  -> vexp[b, (l*n + j)*E + c] = (feats[b,j] @ Wv @ Wo)[c]
    w_vexp = jnp.einsum('l,jk,dc->jdlkc', ones_l, eye_n, wvo_pad).reshape(F, G * e)
    # attn @ r_rep -> attn[b, l*n + j] replicated over the E output channels
    r_rep = jnp.einsum('lm,jk,c->ljmkc', eye_l, eye_n, ones_e).reshape(G, G * e)
    # (.) @ s_sum  -> sum over the n slots for each (l, c)
    s_sum = jnp.einsum('lm,j,cd->ljcmd', eye_l, ones_n, eye_e).reshape(G * e, L * e)
    bias = jnp.tile(b_out, (L,)).reshape(1, L * e)

    # XOR-butterfly permutations (group max) + block-diagonal ones (group sum).
    steps = int(n).bit_length() - 1
    idx = jnp.arange(G)
    mats = [(idx[:, None] == (idx[None, :] ^ (1 << t))).astype(f32)
            for t in range(steps)]
    mats.append((idx[:, None] // n == idx[None, :] // n).astype(f32))
    bfly = jnp.stack(mats, axis=0)                                      # (steps+1, G, G)
    return w_logit, w_mask, w_vexp, r_rep, s_sum, bfly, bias


@functools.partial(jax.jit, static_argnames=("n", "e", "tb"))
def smorl_encoder(x, query, wq, bq, wk, bk, wv, bv, wo, bo, *, n, e, tb=512):
    """Fused SMORLEncoder forward.  x: (B, >= n*(e+1)).  Returns (B, L*e).

    query: (L, e); wq/wk/wv: (e, D); bq/bk/bv: (D,); wo: (D, e); bo: (e,).
    bk is accepted for interface parity but dropped (exact softmax no-op)."""
    del bk
    if n <= 0 or (n & (n - 1)) != 0:
        # TODO(synk): the lane-group softmax assumes n (object slots) is a power
        # of two; generalize with a padded group size if ever needed.
        raise NotImplementedError("n (object slots) must be a power of two")

    B = x.shape[0]
    F = n * (e + 1)
    L = query.shape[0]
    if x.shape[-1] != F:                  # module does x[..., :prod(in_shape)]
        x = x[..., :F]

    w_logit, w_mask, w_vexp, r_rep, s_sum, bfly, bias = _fold_params(
        query, wq, bq, wk, wv, bv, wo, bo, n, e)

    # Batch tiling: big lane-dense 2-D tiles, no padding (partial last block's
    # garbage rows never mix with real rows; their writes are masked).
    TB = B if B <= tb else max(8, (tb // 8) * 8)
    grid = (pl.cdiv(B, TB),)
    steps = int(n).bit_length() - 1

    out = pl.pallas_call(
        functools.partial(_smorl_enc_kernel, n_slots=n),
        out_shape=jax.ShapeDtypeStruct((B, L * e), x.dtype),
        grid_spec=pltpu.PrefetchScalarGridSpec(
            num_scalar_prefetch=0,
            grid=grid,
            in_specs=[
                pl.BlockSpec((TB, F), lambda i: (i, 0)),
                pl.BlockSpec((F, L * n), lambda i: (0, 0)),
                pl.BlockSpec((F, L * n), lambda i: (0, 0)),
                pl.BlockSpec((F, L * n * e), lambda i: (0, 0)),
                pl.BlockSpec((L * n, L * n * e), lambda i: (0, 0)),
                pl.BlockSpec((L * n * e, L * e), lambda i: (0, 0)),
                pl.BlockSpec((steps + 1, L * n, L * n), lambda i: (0, 0, 0)),
                pl.BlockSpec((1, L * e), lambda i: (0, 0)),
            ],
            out_specs=pl.BlockSpec((TB, L * e), lambda i: (i, 0)),
        ),
        compiler_params=pltpu.CompilerParams(
            dimension_semantics=("parallel",)),
    )(x, w_logit, w_mask, w_vexp, r_rep, s_sum, bfly, bias)
    # post_trans: Rearrange('l b c -> b (l c)') == the (B, L*E) layout produced.
    return out


if __name__ == "__main__":
    # Small shapes consistent with the module:
    # B=2, n=8 object slots, c+1=5 latent channels (E=4), L=8 queries, head dim 32.
    B, N, E, L, D = 2, 8, 4, 8, 32

    key = jax.random.PRNGKey(0)
    kx, kp, kq, kwq, kbq, kwk, kbk, kwv, kbv, kwo, kbo = jax.random.split(key, 11)

    x = jax.random.normal(kx, (B, N * (E + 1)), dtype=jnp.float32)
    # z_pres channel in [0, 1] with some exact zeros so the mask actually matters.
    pres = jax.random.uniform(kp, (B, N), dtype=jnp.float32)
    pres = jnp.where(pres > 0.4, pres, 0.0)
    x = x.reshape(B, N, E + 1).at[..., E].set(pres).reshape(B, N * (E + 1))

    def lin_init(kw, kb, fan_in, fan_out):
        bound = 1.0 / float(fan_in) ** 0.5
        w = jax.random.uniform(kw, (fan_in, fan_out), jnp.float32, -bound, bound)
        b = jax.random.uniform(kb, (fan_out,), jnp.float32, -bound, bound)
        return w, b

    query = jax.random.normal(kq, (L, E), dtype=jnp.float32)   # learned query slots
    wq, bq = lin_init(kwq, kbq, E, D)
    wk, bk = lin_init(kwk, kbk, E, D)
    wv, bv = lin_init(kwv, kbv, E, D)
    wo, bo = lin_init(kwo, kbo, D, E)

    out = smorl_encoder(x, query, wq, bq, wk, bk, wv, bv, wo, bo, n=N, e=E)
    out = jax.block_until_ready(out)

    # Pure-JAX reference of the same forward pass (un-folded, bk included, so the
    # algebraic folding inside the kernel is validated too).
    hi = jax.lax.Precision.HIGHEST
    xr = x.reshape(B, N, E + 1)
    featsr = xr[..., :E]
    presr = xr[..., E]
    q_proj = jnp.dot(query, wq, precision=hi) + bq
    kr = jnp.einsum('bnd,de->bne', featsr, wk, precision=hi) + bk
    vr = jnp.einsum('bnd,de->bne', featsr, wv, precision=hi) + bv
    logitsr = jnp.einsum('ld,bnd->bln', q_proj, kr, precision=hi) / (D ** 0.5)
    logitsr = jnp.where(presr[:, None, :] > 0.0, logitsr, -1e9)
    attnr = jax.nn.softmax(logitsr, axis=-1)                   # (B, L, N)
    ctx = jnp.einsum('bln,bnd->bld', attnr, vr, precision=hi)
    refr = jnp.einsum('bld,de->ble', ctx, wo, precision=hi) + bo
    ref = refr.reshape(B, L * E)

    assert out.shape == (B, L * E)
    # Tolerance covers the approximate EUP reciprocal used for the softmax
    # normalisation; all matmuls run at HIGHEST precision.
    assert jnp.allclose(out, ref, rtol=5e-3, atol=5e-3), "mismatch vs reference"
    print("KERNEL_OK")
</pallas_src>

<mosaic_0001>
module attributes {stable_mosaic.version = 11 : i64} {
  func.func @_smorl_enc_kernel(%arg0: i32, %arg1: memref<2x40xf32, #tpu.memory_space<vmem>>, %arg2: memref<40x64xf32, #tpu.memory_space<vmem>>, %arg3: memref<40x64xf32, #tpu.memory_space<vmem>>, %arg4: memref<40x256xf32, #tpu.memory_space<vmem>>, %arg5: memref<64x256xf32, #tpu.memory_space<vmem>>, %arg6: memref<256x32xf32, #tpu.memory_space<vmem>>, %arg7: memref<4x64x64xf32, #tpu.memory_space<vmem>>, %arg8: memref<1x32xf32, #tpu.memory_space<vmem>>, %arg9: memref<2x32xf32, #tpu.memory_space<vmem>>) attributes {dimension_semantics = [#tpu.dimension_semantics<parallel>], iteration_bounds = array<i64: 1>, scalar_prefetch = 0 : i64, scratch_operands = 0 : i64, tpu.core_type = #tpu.core_type<tc>, window_params = [{transform_indices = @transform_0, window_bounds = array<i64: 2, 40>}, {pipeline_mode = #tpu.pipeline_mode<synchronous>, transform_indices = @transform_1, window_bounds = array<i64: 40, 64>}, {pipeline_mode = #tpu.pipeline_mode<synchronous>, transform_indices = @transform_2, window_bounds = array<i64: 40, 64>}, {pipeline_mode = #tpu.pipeline_mode<synchronous>, transform_indices = @transform_3, window_bounds = array<i64: 40, 256>}, {pipeline_mode = #tpu.pipeline_mode<synchronous>, transform_indices = @transform_4, window_bounds = array<i64: 64, 256>}, {pipeline_mode = #tpu.pipeline_mode<synchronous>, transform_indices = @transform_5, window_bounds = array<i64: 256, 32>}, {pipeline_mode = #tpu.pipeline_mode<synchronous>, transform_indices = @transform_6, window_bounds = array<i64: 4, 64, 64>}, {pipeline_mode = #tpu.pipeline_mode<synchronous>, transform_indices = @transform_7, window_bounds = array<i64: 1, 32>}, {transform_indices = @transform_8, window_bounds = array<i64: 2, 32>}]} {
    %c0 = arith.constant 0 : index
    %c0_0 = arith.constant 0 : index
    %0 = vector.load %arg1[%c0, %c0_0] : memref<2x40xf32, #tpu.memory_space<vmem>>, vector<2x40xf32>
    %c0_1 = arith.constant 0 : index
    %c0_2 = arith.constant 0 : index
    %1 = vector.load %arg2[%c0_1, %c0_2] : memref<40x64xf32, #tpu.memory_space<vmem>>, vector<40x64xf32>
    %cst = arith.constant dense<0.000000e+00> : vector<2x64xf32>
    %2 = tpu.matmul %0, %1, %cst {dimension_numbers = #tpu.dot_dimension_numbers<[1], [0], [0], [1], [0, 0, 1, 1], [], []>, precision = #tpu.contract_precision<fp32>} : vector<2x40xf32>, vector<40x64xf32>, vector<2x64xf32> -> vector<2x64xf32>
    %c0_3 = arith.constant 0 : index
    %c0_4 = arith.constant 0 : index
    %3 = vector.load %arg3[%c0_3, %c0_4] : memref<40x64xf32, #tpu.memory_space<vmem>>, vector<40x64xf32>
    %cst_5 = arith.constant dense<0.000000e+00> : vector<2x64xf32>
    %4 = tpu.matmul %0, %3, %cst_5 {dimension_numbers = #tpu.dot_dimension_numbers<[1], [0], [0], [1], [0, 0, 1, 1], [], []>, precision = #tpu.contract_precision<fp32>} : vector<2x40xf32>, vector<40x64xf32>, vector<2x64xf32> -> vector<2x64xf32>
    %cst_6 = arith.constant 0.000000e+00 : f32
    %5 = vector.broadcast %cst_6 : f32 to vector<2x64xf32>
    %6 = arith.cmpf ogt, %4, %5 : vector<2x64xf32>
    %cst_7 = arith.constant -1.000000e+09 : f32
    %7 = vector.broadcast %cst_7 : f32 to vector<2x64xf32>
    %8 = arith.select %6, %2, %7 : vector<2x64xi1>, vector<2x64xf32>
    %c0_8 = arith.constant 0 : index
    %c0_9 = arith.constant 0 : index
    %c0_10 = arith.constant 0 : index
    %9 = vector.load %arg7[%c0_8, %c0_9, %c0_10] : memref<4x64x64xf32, #tpu.memory_space<vmem>>, vector<1x64x64xf32>
    %10 = vector.shape_cast %9 : vector<1x64x64xf32> to vector<64x64xf32>
    %cst_11 = arith.constant dense<0.000000e+00> : vector<2x64xf32>
    %11 = tpu.matmul %8, %10, %cst_11 {dimension_numbers = #tpu.dot_dimension_numbers<[1], [0], [0], [1], [0, 0, 1, 1], [], []>, precision = #tpu.contract_precision<fp32>} : vector<2x64xf32>, vector<64x64xf32>, vector<2x64xf32> -> vector<2x64xf32>
    %12 = arith.maximumf %8, %11 : vector<2x64xf32>
    %c1 = arith.constant 1 : index
    %c0_12 = arith.constant 0 : index
    %c0_13 = arith.constant 0 : index
    %13 = vector.load %arg7[%c1, %c0_12, %c0_13] : memref<4x64x64xf32, #tpu.memory_space<vmem>>, vector<1x64x64xf32>
    %14 = vector.shape_cast %13 : vector<1x64x64xf32> to vector<64x64xf32>
    %cst_14 = arith.constant dense<0.000000e+00> : vector<2x64xf32>
    %15 = tpu.matmul %12, %14, %cst_14 {dimension_numbers = #tpu.dot_dimension_numbers<[1], [0], [0], [1], [0, 0, 1, 1], [], []>, precision = #tpu.contract_precision<fp32>} : vector<2x64xf32>, vector<64x64xf32>, vector<2x64xf32> -> vector<2x64xf32>
    %16 = arith.maximumf %12, %15 : vector<2x64xf32>
    %c2 = arith.constant 2 : index
    %c0_15 = arith.constant 0 : index
    %c0_16 = arith.constant 0 : index
    %17 = vector.load %arg7[%c2, %c0_15, %c0_16] : memref<4x64x64xf32, #tpu.memory_space<vmem>>, vector<1x64x64xf32>
    %18 = vector.shape_cast %17 : vector<1x64x64xf32> to vector<64x64xf32>
    %cst_17 = arith.constant dense<0.000000e+00> : vector<2x64xf32>
    %19 = tpu.matmul %16, %18, %cst_17 {dimension_numbers = #tpu.dot_dimension_numbers<[1], [0], [0], [1], [0, 0, 1, 1], [], []>, precision = #tpu.contract_precision<fp32>} : vector<2x64xf32>, vector<64x64xf32>, vector<2x64xf32> -> vector<2x64xf32>
    %20 = arith.maximumf %16, %19 : vector<2x64xf32>
    %21 = arith.subf %8, %20 : vector<2x64xf32>
    %22 = math.exp %21 : vector<2x64xf32>
    %c3 = arith.constant 3 : index
    %c0_18 = arith.constant 0 : index
    %c0_19 = arith.constant 0 : index
    %23 = vector.load %arg7[%c3, %c0_18, %c0_19] : memref<4x64x64xf32, #tpu.memory_space<vmem>>, vector<1x64x64xf32>
    %24 = vector.shape_cast %23 : vector<1x64x64xf32> to vector<64x64xf32>
    %cst_20 = arith.constant dense<0.000000e+00> : vector<2x64xf32>
    %25 = tpu.matmul %22, %24, %cst_20 {dimension_numbers = #tpu.dot_dimension_numbers<[1], [0], [0], [1], [0, 0, 1, 1], [], []>, precision = #tpu.contract_precision<fp32>} : vector<2x64xf32>, vector<64x64xf32>, vector<2x64xf32> -> vector<2x64xf32>
    %26 = tpu.reciprocal %25 {approx = true} : vector<2x64xf32> -> vector<2x64xf32>
    %27 = arith.mulf %22, %26 : vector<2x64xf32>
    %c0_21 = arith.constant 0 : index
    %c0_22 = arith.constant 0 : index
    %28 = vector.load %arg4[%c0_21, %c0_22] : memref<40x256xf32, #tpu.memory_space<vmem>>, vector<40x256xf32>
    %cst_23 = arith.constant dense<0.000000e+00> : vector<2x256xf32>
    %29 = tpu.matmul %0, %28, %cst_23 {dimension_numbers = #tpu.dot_dimension_numbers<[1], [0], [0], [1], [0, 0, 1, 1], [], []>, precision = #tpu.contract_precision<fp32>} : vector<2x40xf32>, vector<40x256xf32>, vector<2x256xf32> -> vector<2x256xf32>
    %c0_24 = arith.constant 0 : index
    %c0_25 = arith.constant 0 : index
    %30 = vector.load %arg5[%c0_24, %c0_25] : memref<64x256xf32, #tpu.memory_space<vmem>>, vector<64x256xf32>
    %cst_26 = arith.constant dense<0.000000e+00> : vector<2x256xf32>
    %31 = tpu.matmul %27, %30, %cst_26 {dimension_numbers = #tpu.dot_dimension_numbers<[1], [0], [0], [1], [0, 0, 1, 1], [], []>, precision = #tpu.contract_precision<fp32>} : vector<2x64xf32>, vector<64x256xf32>, vector<2x256xf32> -> vector<2x256xf32>
    %32 = arith.mulf %31, %29 : vector<2x256xf32>
    %c0_27 = arith.constant 0 : index
    %c0_28 = arith.constant 0 : index
    %33 = vector.load %arg6[%c0_27, %c0_28] : memref<256x32xf32, #tpu.memory_space<vmem>>, vector<256x32xf32>
    %cst_29 = arith.constant dense<0.000000e+00> : vector<2x32xf32>
    %34 = tpu.matmul %32, %33, %cst_29 {dimension_numbers = #tpu.dot_dimension_numbers<[1], [0], [0], [1], [0, 0, 1, 1], [], []>, precision = #tpu.contract_precision<fp32>} : vector<2x256xf32>, vector<256x32xf32>, vector<2x32xf32> -> vector<2x32xf32>
    %c0_30 = arith.constant 0 : index
    %c0_31 = arith.constant 0 : index
    %35 = vector.load %arg8[%c0_30, %c0_31] : memref<1x32xf32, #tpu.memory_space<vmem>>, vector<1x32xf32>
    %36 = vector.broadcast %35 : vector<1x32xf32> to vector<2x32xf32>
    %37 = arith.addf %34, %36 : vector<2x32xf32>
    %c0_32 = arith.constant 0 : index
    %c0_33 = arith.constant 0 : index
    %38 = vector.load %arg9[%c0_32, %c0_33] : memref<2x32xf32, #tpu.memory_space<vmem>>, vector<2x32xf32>
    tpu.vector_store %arg9[%c0_32, %c0_33], %37 {strides = array<i32>} : memref<2x32xf32, #tpu.memory_space<vmem>>, vector<2x32xf32>,
    return
  }
  func.func @transform_0(%arg0: i32) -> (i32, i32) {
    %c0_i32 = arith.constant 0 : i32
    %c0_i32_0 = arith.constant 0 : i32
    return %arg0, %c0_i32 : i32, i32
  }
  func.func @transform_1(%arg0: i32) -> (i32, i32) {
    %c0_i32 = arith.constant 0 : i32
    %c0_i32_0 = arith.constant 0 : i32
    %c0_i32_1 = arith.constant 0 : i32
    return %c0_i32, %c0_i32_0 : i32, i32
  }
  func.func @transform_2(%arg0: i32) -> (i32, i32) {
    %c0_i32 = arith.constant 0 : i32
    %c0_i32_0 = arith.constant 0 : i32
    %c0_i32_1 = arith.constant 0 : i32
    return %c0_i32, %c0_i32_0 : i32, i32
  }
  func.func @transform_3(%arg0: i32) -> (i32, i32) {
    %c0_i32 = arith.constant 0 : i32
    %c0_i32_0 = arith.constant 0 : i32
    %c0_i32_1 = arith.constant 0 : i32
    return %c0_i32, %c0_i32_0 : i32, i32
  }
  func.func @transform_4(%arg0: i32) -> (i32, i32) {
    %c0_i32 = arith.constant 0 : i32
    %c0_i32_0 = arith.constant 0 : i32
    %c0_i32_1 = arith.constant 0 : i32
    return %c0_i32, %c0_i32_0 : i32, i32
  }
  func.func @transform_5(%arg0: i32) -> (i32, i32) {
    %c0_i32 = arith.constant 0 : i32
    %c0_i32_0 = arith.constant 0 : i32
    %c0_i32_1 = arith.constant 0 : i32
    return %c0_i32, %c0_i32_0 : i32, i32
  }
  func.func @transform_6(%arg0: i32) -> (i32, i32, i32) {
    %c0_i32 = arith.constant 0 : i32
    %c0_i32_0 = arith.constant 0 : i32
    %c0_i32_1 = arith.constant 0 : i32
    %c0_i32_2 = arith.constant 0 : i32
    return %c0_i32, %c0_i32_0, %c0_i32_1 : i32, i32, i32
  }
  func.func @transform_7(%arg0: i32) -> (i32, i32) {
    %c0_i32 = arith.constant 0 : i32
    %c0_i32_0 = arith.constant 0 : i32
    %c0_i32_1 = arith.constant 0 : i32
    return %c0_i32, %c0_i32_0 : i32, i32
  }
  func.func @transform_8(%arg0: i32) -> (i32, i32) {
    %c0_i32 = arith.constant 0 : i32
    %c0_i32_0 = arith.constant 0 : i32
    return %arg0, %c0_i32 : i32, i32
  }
}

</mosaic_0001>

<bundles_post_ra>
// kernel: tile.8
= control target key start
LH: loop header
LB: loop body
LE: loop exit
PB: predicated region body
PF: predicated region fallthrough
CT: control target
= control target key end

     0   :  { %s22_s0 = inlined_call_operand.vmem [shape: f32[4], index: 0, kind: input, shape index: {}]   ;;  %s23_s1 = inlined_call_operand.vmem [shape: f32[8,4], index: 1, kind: output, shape index: {}]  }
   0x1   :  { %v4_v0 = vld [vmem:[%s22_s0] ss:$0 sm:$0xff] }
   0x2   :  { %5 = vst [vmem:[%s23_s1] sm:$0xff] %v4_v0 }

// kernel: tile.9
= control target key start
LH: loop header
LB: loop body
LE: loop exit
PB: predicated region body
PF: predicated region fallthrough
CT: control target
= control target key end

     0   :  { %s67_s10 = smov 28   ;;  %s68_s11 = smov 20   ;;  %vm3_vm0 = vcmask 31744   ;;  %vm9_vm1 = vcmask 261344   ;;  %vm15_vm2 = vcmask 228544   ;;  %vm21_vm3 = vcmask 195744   ;;  %s111_s0 = inlined_call_operand.vmem [shape: f32[8,4], index: 0, kind: input, shape index: {}]   ;;  %s112_s1 = inlined_call_operand.vmem [shape: f32[1,32], index: 1, kind: output, shape index: {}]  }
   0x1   :  { %v53_v0 = vld [vmem:[%s111_s0 + $0x7] sm:$0x1]   ;;  %v55_v1 = vld [vmem:[%s111_s0 + $0x5] sm:$0x1]   ;;  %v54_v2 = vld [vmem:[%s111_s0 + $0x6] sm:$0x1]  }
   0x2   :  { %7 = vrot.lane.b32.xlu0 %v53_v0, %s67_s10  ;;  %19 = vrot.lane.b32.xlu1 %v55_v1, %s68_s11  ;;  %v56_v3 = vld [vmem:[%s111_s0 + $0x4] sm:$0x1]   ;;  %v2_v4 = vld [vmem:[%s111_s0] sm:$0x1]   ;;  %s69_s18 = smov 24   ;;  %s70_s19 = smov 16  }
   0x3   :  { %4 = vst.msk [vmem:[#allocation0] sm:$0x1] %vm3_vm0, %v2_v4   ;;  %v57_v5 = vld [vmem:[%s111_s0 + $0x3] sm:$0x1]   ;;  %v58_v6 = vld [vmem:[%s111_s0 + $0x2] sm:$0x1]  }
   0x4   :  { %s71_s24 = smov 12   ;;  %s72_s25 = smov 8   ;;  %v59_v7 = vld [vmem:[%s111_s0 + $0x1] sm:$0x1]   ;;  %vm27_vm4 = vcmask 162944   ;;  %vm33_vm5 = vcmask 130144  }
   0x5   :  { %s73_s0 = smov 4   ;;  %vm39_vm6 = vcmask 97344   ;;  %vm45_vm7 = vcmask 64544  }
   0x6   :  { %13 = vrot.lane.b32.xlu0 %v54_v2, %s69_s18  ;;  %25 = vrot.lane.b32.xlu1 %v56_v3, %s70_s19 }
   0xa   :  { %31 = vrot.lane.b32.xlu0 %v57_v5, %s71_s24  ;;  %37 = vrot.lane.b32.xlu1 %v58_v6, %s72_s25 }
   0xe   :  { %43 = vrot.lane.b32.xlu0 %v59_v7, %s73_s0 }
  0x74   :  { %v8_v8 = vpop.permute.xlu0 %7   ;;  %v20_v9 = vpop.permute.xlu1 %19  }
  0x75   :  { %10 = vst.msk [vmem:[#allocation0] sm:$0x1] %vm9_vm1, %v8_v8  }
  0x78   :  { %v14_v10 = vpop.permute.xlu0 %13   ;;  %v26_v11 = vpop.permute.xlu1 %25  }
  0x79   :  { %16 = vst.msk [vmem:[#allocation0] sm:$0x1] %vm15_vm2, %v14_v10  }
  0x7a   :  { %22 = vst.msk [vmem:[#allocation0] sm:$0x1] %vm21_vm3, %v20_v9  }
  0x7b   :  { %28 = vst.msk [vmem:[#allocation0] sm:$0x1] %vm27_vm4, %v26_v11  }
  0x7c   :  { %v32_v12 = vpop.permute.xlu0 %31   ;;  %v38_v13 = vpop.permute.xlu1 %37  }
  0x7d   :  { %34 = vst.msk [vmem:[#allocation0] sm:$0x1] %vm33_vm5, %v32_v12  }
  0x7e   :  { %40 = vst.msk [vmem:[#allocation0] sm:$0x1] %vm39_vm6, %v38_v13  }
  0x80   :  { %v44_v14 = vpop.permute.xlu0 %43  }
  0x81   :  { %46 = vst.msk [vmem:[#allocation0] sm:$0x1] %vm45_vm7, %v44_v14  }
  0x88   :  { %v50_v15 = vld [vmem:[#allocation0] sm:$0x1] }
  0x89   :  { %52 = vst [vmem:[%s112_s1] sm:$0x1] %v50_v15 }

// kernel: smorl_encoder.1
= control target key start
LH: loop header
LB: loop body
LE: loop exit
PB: predicated region body
PF: predicated region fallthrough
CT: control target
= control target key end

     0   :  { %v7353_v3 = vmov 0.0|0.0   ;;  %vm7354_vm0 = vmmov 0   ;;  %v9100_v15 = vmov 0.0   ;;  %vm36_vm1 = vcmask 326656   ;;  %s9071_s0 = inlined_call_operand.vmem [shape: f32[2,40], index: 0, kind: input, shape index: {}]   ;;  %s9072_s1 = inlined_call_operand.vmem [shape: f32[40,64], index: 1, kind: input, shape index: {}]   ;;  %s9073_s2 = inlined_call_operand.vmem [shape: f32[40,64], index: 2, kind: input, shape index: {}]   ;;  %s9074_s3 = inlined_call_operand.vmem [shape: f32[40,256], index: 3, kind: input, shape index: {}]   ;;  %s9075_s4 = inlined_call_operand.vmem [shape: f32[64,256], index: 4, kind: input, shape index: {}]   ;;  %s9076_s5 = inlined_call_operand.vmem [shape: f32[256,32], index: 5, kind: input, shape index: {}]   ;;  %s9077_s6 = inlined_call_operand.vmem [shape: f32[4,64,64], index: 6, kind: input, shape index: {}]   ;;  %s9078_s7 = inlined_call_operand.vmem [shape: f32[1,32], index: 7, kind: input, shape index: {}]   ;;  %s9079_s8 = inlined_call_operand.hbm [shape: f32[2,32], index: 8, kind: output, shape index: {}]  }
   0x1   :  { %v31_v0 = vld [vmem:[%s9072_s1] sm:$0xff]  ;;  %v32_v1 = vld [vmem:[%s9072_s1 + $0x8] sm:$0xff]  ;;  %6546 = vmatprep.subr.bf16.mxu0 %v7353_v3  ;;  %6582 = vmatprep.subr.bf16.mxu1 %v7353_v3  ;;  %v33_v8 = vld [vmem:[%s9072_s1 + $0x10] sm:$0xff] }
   0x2   :  { %v538_v2 = vld [vmem:[%s9073_s2] sm:$0xff]  ;;  %v41_v4 = vand.u32 4294901760, %v31_v0  ;;  %v44_v5 = vand.u32 4294901760, %v32_v1  ;;  %v539_v6 = vld [vmem:[%s9073_s2 + $0x8] sm:$0xff]  ;;  %v34_v9 = vld [vmem:[%s9072_s1 + $0x18] sm:$0xff]  ;;  %v47_v11 = vand.u32 4294901760, %v33_v8  ;;  %5944 = vmatprep.mubr.msk.f32.mxu0 %vm7354_vm0, %v9100_v15  ;;  %6022 = vmatprep.mubr.msk.f32.mxu1 %vm7354_vm0, %v9100_v15 }
   0x3   :  { %v544_v7 = vand.u32 4294901760, %v538_v2  ;;  %v547_v10 = vand.u32 4294901760, %v539_v6  ;;  %v50_v12 = vand.u32 4294901760, %v34_v9  ;;  %v540_v13 = vld [vmem:[%s9073_s2 + $0x10] sm:$0xff]  ;;  %v541_v14 = vld [vmem:[%s9073_s2 + $0x18] sm:$0xff]  ;;  %v35_v19 = vld [vmem:[%s9072_s1 + $0x20] sm:$0xff] }
   0x4   :  { %v7432_v16 = vpack.c.bf16 %v44_v5, %v41_v4  ;;  %v7434_v17 = vsub.f32 %v31_v0, %v41_v4  ;;  %v7436_v18 = vsub.f32 %v32_v1, %v44_v5  ;;  %v542_v24 = vld [vmem:[%s9073_s2 + $0x20] sm:$0xff]  ;;  %v7453_v25 = vsub.f32 %v33_v8, %v47_v11 }
   0x5   :  { %v7441_v20 = vpack.c.bf16 %v547_v10, %v544_v7  ;;  %v7443_v21 = vsub.f32 %v538_v2, %v544_v7  ;;  %v7445_v22 = vsub.f32 %v539_v6, %v547_v10  ;;  %v7447_v23 = vpack.c.bf16 %v50_v12, %v47_v11  ;;  %v30_v29 = vld [vmem:[%s9071_s0] sm:$0x3] }
   0x6   :  { %6548 = vmatpush3.bf16.msra.mxu0 %v7432_v16  ;;  %v7455_v26 = vsub.f32 %v34_v9, %v50_v12  ;;  %v550_v27 = vand.u32 4294901760, %v540_v13  ;;  %v553_v28 = vand.u32 4294901760, %v541_v14  ;;  %v7462_v30 = vand.u32 4294901760, %v35_v19 }
   0x7   :  { %6584 = vmatpush3.bf16.msra.mxu1 %v7441_v20  ;;  %6549 = vmatprep.subr.bf16.mxu0 %v7353_v3  ;;  %v123_v31 = vand.u32 4294901760, %v7434_v17  ;;  %v130_v32 = vand.u32 4294901760, %v7436_v18 }
   0x8   :  { %13 = vsyncpa [#allocation3], 0  ;;  %6585 = vmatprep.subr.bf16.mxu1 %v7353_v3  ;;  %v7467_v33 = vpack.c.bf16 %v553_v28, %v550_v27  ;;  %v7469_v34 = vsub.f32 %v540_v13, %v550_v27  ;;  %v7471_v35 = vsub.f32 %v541_v14, %v553_v28  ;;  %v7473_v36 = vand.u32 4294901760, %v542_v24  ;;  %v7590_v28 = vld [vmem:[%s9077_s6] sm:$0xff]  ;;  %s7356_s21 = smov [#allocation2]  }
   0x9   :  { %v7476_v37 = vsub.f32 %v35_v19, %v7462_v30  ;;  %v38_v38 = vsel %vm36_vm1, %v30_v29, 0  ;;  %v124_v39 = vsub.f32 %v7434_v17, %v123_v31  ;;  %v131_v40 = vsub.f32 %v7436_v18, %v130_v32  ;;  %v7595_v29 = vld [vmem:[%s9077_s6 + $0x8] sm:$0xff]  ;;  %s5403_s22 = sshll.u32 %s7356_s21, 4  ;;  %s5404_s22 = int_to_ptr.vmem [resolvable:$true] %s5403_s22 }
   0xa   :  { %6551 = vmatpush3.bf16.msra.mxu0 %v7447_v23  ;;  %v7485_v41 = vand.u32 4294901760, %v38_v38  ;;  %v626_v42 = vand.u32 4294901760, %v7443_v21  ;;  %v633_v43 = vand.u32 4294901760, %v7445_v22  ;;  %v137_v44 = vand.u32 4294901760, %v7453_v25  ;;  %p7334_p1 = scmp.lt.s32.totalorder %s5404_s22, %s5404_s22 }
   0xb   :  { %6587 = vmatpush3.bf16.msra.mxu1 %v7467_v33  ;;  %5942 = vmatprep.subr.mxu0 %v9100_v15  ;;  %v125_v45 = vand.u32 4294901760, %v124_v39  ;;  %v132_v46 = vand.u32 4294901760, %v131_v40  ;;  %v144_v47 = vand.u32 4294901760, %v7455_v26  ;;  %v640_v48 = vand.u32 4294901760, %v7469_v34 }
   0xc   :  { %6020 = vmatprep.subr.mxu1 %v9100_v15  ;;  %v7496_v49 = vsub.f32 %v38_v38, %v7485_v41  ;;  %v627_v50 = vsub.f32 %v7443_v21, %v626_v42  ;;  %v634_v51 = vsub.f32 %v7445_v22, %v633_v43  ;;  %v138_v52 = vsub.f32 %v7453_v25, %v137_v44 }
   0xd   :  { %v7508_v53 = vsub.f32 %v542_v24, %v7473_v36  ;;  %v145_v54 = vsub.f32 %v7455_v26, %v144_v47  ;;  %v641_v55 = vsub.f32 %v7469_v34, %v640_v48  ;;  %v647_v56 = vand.u32 4294901760, %v7471_v35 }
   0xe   :  { %5943 = vmatpush3.msra.mxu0 %v7462_v30  ;;  %v7519_v57 = vand.u32 4294901760, %v7496_v49  ;;  %v628_v58 = vand.u32 4294901760, %v627_v50  ;;  %v635_v59 = vand.u32 4294901760, %v634_v51  ;;  %v6553_v60 = vpack.c.bf16 %v132_v46, %v125_v45 }
   0xf   :  { %6021 = vmatpush3.msra.mxu1 %v7473_v36  ;;  %6552 = vmatprep.subr.bf16.mxu0 %v7353_v3  ;;  %v648_v61 = vsub.f32 %v7471_v35, %v647_v56  ;;  %v139_v63 = vand.u32 4294901760, %v138_v52  ;;  %v146_v0 = vand.u32 4294901760, %v145_v54  ;;  %v642_v1 = vand.u32 4294901760, %v641_v55 }
  0x10   :  { %6588 = vmatprep.subr.bf16.mxu1 %v7353_v3  ;;  %v113_v62 = vsub.f32 %v7496_v49, %v7519_v57  ;;  %v6589_v2 = vpack.c.bf16 %v635_v59, %v628_v58  ;;  %v151_v5 = vand.u32 4294901760, %v7476_v37  ;;  %v654_v6 = vand.u32 4294901760, %v7508_v53 }
  0x11   :  { %v649_v4 = vand.u32 4294901760, %v648_v61  ;;  %v6556_v8 = vpack.c.bf16 %v146_v0, %v139_v63  ;;  %v6559_v14 = vpack.c.bf16 %v7436_v18, %v7434_v17  ;;  %v6595_v19 = vpack.c.bf16 %v7445_v22, %v7443_v21  ;;  %v7616_v18 = vld [vmem:[%s9077_s6 + $0x10] sm:$0xff]  ;;  %v7621_v21 = vld [vmem:[%s9077_s6 + $0x18] sm:$0xff] }
  0x12   :  { %v7531_v7 = vand.u32 4294901760, %v113_v62  ;;  %v152_v10 = vsub.f32 %v7476_v37, %v151_v5  ;;  %v655_v11 = vsub.f32 %v7508_v53, %v654_v6  ;;  %v6562_v24 = vpack.c.bf16 %v7455_v26, %v7453_v25 }
  0x13   :  { %v6592_v9 = vpack.c.bf16 %v649_v4, %v642_v1  ;;  %v6598_v27 = vpack.c.bf16 %v7471_v35, %v7469_v34  ;;  %v6571_v38 = vpack.c.bf16 %v130_v32, %v123_v31  ;;  %v6607_v39 = vpack.c.bf16 %v633_v43, %v626_v42  ;;  %v7648_v35 = vld [vmem:[%s9077_s6 + $0x20] sm:$0xff]  ;;  %v7653_v42 = vld [vmem:[%s9077_s6 + $0x28] sm:$0xff]  ;;  %v1050_v4 = vld [vmem:[%s9077_s6 + $0x38] sm:$0xff] }
  0x14   :  { %5945 = vmatmul.mubr.f32.vlgmr.msra.gmra.mrb[0].mxu0 %v7531_v7  ;;  %6023 = vmatmul.mubr.f32.vlgmr.msra.gmra.mrb[0].mxu1 %v7531_v7  ;;  %v153_v12 = vand.u32 4294901760, %v152_v10  ;;  %v656_v13 = vand.u32 4294901760, %v655_v11  ;;  %v1056_v40 = vand.u32 4294901760, %v7590_v28  ;;  %v1059_v17 = vand.u32 4294901760, %v7595_v29 }
  0x15   :  { %6554 = vmatpush3.bf16.msra.mxu0 %v6553_v60  ;;  %6590 = vmatpush3.bf16.msra.mxu1 %v6589_v2  ;;  %v6574_v22 = vpack.c.bf16 %v144_v47, %v137_v44  ;;  %v6610_v31 = vpack.c.bf16 %v647_v56, %v640_v48  ;;  %v1062_v32 = vand.u32 4294901760, %v7616_v18  ;;  %v1065_v34 = vand.u32 4294901760, %v7621_v21 }
  0x16   :  { %6555 = vmatprep.subr.bf16.mxu0 %v7353_v3  ;;  %6591 = vmatprep.subr.bf16.mxu1 %v7353_v3  ;;  %v7638_v25 = vsub.f32 %v7590_v28, %v1056_v40  ;;  %v7641_v26 = vsub.f32 %v7595_v29, %v1059_v17  ;;  %v1068_v43 = vand.u32 4294901760, %v7648_v35  ;;  %v1071_v44 = vand.u32 4294901760, %v7653_v42 }
  0x17   :  { %5957 = vmatprep.mubr.msk.f32.mxu0 %vm7354_vm0, %v9100_v15  ;;  %6035 = vmatprep.mubr.msk.f32.mxu1 %vm7354_vm0, %v9100_v15  ;;  %v7664_v47 = vsub.f32 %v7616_v18, %v1062_v32  ;;  %v7669_v48 = vsub.f32 %v7621_v21, %v1065_v34  ;;  %v7720_v61 = vpack.c.bf16 %v1059_v17, %v1056_v40  ;;  %vm1051_vm2 = vcmask 523264  }
  0x18   :  { %v1141_v45 = vand.u32 4294901760, %v7638_v25  ;;  %v1148_v46 = vand.u32 4294901760, %v7641_v26  ;;  %v7680_v50 = vsub.f32 %v7648_v35, %v1068_v43  ;;  %v7685_v51 = vsub.f32 %v7653_v42, %v1071_v44 }
  0x19   :  { %6557 = vmatpush3.bf16.msra.mxu0 %v6556_v8  ;;  %6593 = vmatpush3.bf16.msra.mxu1 %v6592_v9  ;;  %v1162_v54 = vand.u32 4294901760, %v7669_v48  ;;  %v7759_v28 = vpack.c.bf16 %v1071_v44, %v1068_v43  ;;  %v6646_v42 = vpack.c.bf16 %v7669_v48, %v7664_v47  ;;  %vm5395_vm4 = vcmask 254976  }
  0x1a   :  { %5955 = vmatprep.subr.mxu0 %v9100_v15  ;;  %6033 = vmatprep.subr.mxu1 %v9100_v15  ;;  %v1149_v52 = vsub.f32 %v7641_v26, %v1148_v46  ;;  %v1169_v55 = vand.u32 4294901760, %v7680_v50  ;;  %v1176_v56 = vand.u32 4294901760, %v7685_v51 }
  0x1c   :  { %v1150_v59 = vand.u32 4294901760, %v1149_v52  ;;  %v1170_v60 = vsub.f32 %v7680_v50, %v1169_v55  ;;  %v1177_v1 = vsub.f32 %v7685_v51, %v1176_v56 }
  0x1d   :  { %5956 = vmatpush3.msra.mxu0 %v153_v12  ;;  %6034 = vmatpush3.msra.mxu1 %v656_v13 }
  0x1e   :  { %6558 = vmatprep.subr.bf16.mxu0 %v7353_v3  ;;  %6594 = vmatprep.subr.bf16.mxu1 %v7353_v3  ;;  %v1178_v2 = vand.u32 4294901760, %v1177_v1  ;;  %v5418_v1 = vld [vmem:[%s9077_s6 + $0x78] sm:$0xff] }
  0x1f   :  { %5958 = vmatmul.mubr.f32.vlgmr.msra.gmra.mrb[0].mxu0 %v7485_v41  ;;  %6036 = vmatmul.mubr.f32.vlgmr.msra.gmra.mrb[0].mxu1 %v7485_v41 }
  0x20   :  { %6560 = vmatpush3.bf16.msra.mxu0 %v6559_v14  ;;  %6596 = vmatpush3.bf16.msra.mxu1 %v6595_v19 }
  0x21   :  { %6561 = vmatprep.subr.bf16.mxu0 %v7353_v3  ;;  %6597 = vmatprep.subr.bf16.mxu1 %v7353_v3 }
  0x22   :  { %5970 = vmatprep.mubr.msk.f32.mxu0 %vm7354_vm0, %v9100_v15  ;;  %6048 = vmatprep.mubr.msk.f32.mxu1 %vm7354_vm0, %v9100_v15 }
  0x24   :  { %6563 = vmatpush3.bf16.msra.mxu0 %v6562_v24  ;;  %6599 = vmatpush3.bf16.msra.mxu1 %v6598_v27  ;;  %v7750_v27 = vpack.c.bf16 %v1065_v34, %v1062_v32  ;;  %v6643_v32 = vpack.c.bf16 %v7641_v26, %v7638_v25  ;;  %v5411_v26 = vld [vmem:[%s9077_s6 + $0x40] sm:$0xff] }
  0x25   :  { %5968 = vmatprep.subr.mxu0 %v9100_v15  ;;  %6046 = vmatprep.subr.mxu1 %v9100_v15 }
  0x28   :  { %5969 = vmatpush3.msra.mxu0 %v7476_v37  ;;  %6047 = vmatpush3.msra.mxu1 %v7508_v53  ;;  %v1142_v37 = vsub.f32 %v7638_v25, %v1141_v45  ;;  %v1155_v53 = vand.u32 4294901760, %v7664_v47  ;;  %v6673_v25 = vpack.c.bf16 %v1176_v56, %v1169_v55  ;;  %v5415_v56 = vld [vmem:[%s9077_s6 + $0x60] sm:$0xff] }
  0x29   :  { %6564 = vmatprep.subr.bf16.mxu0 %v7353_v3  ;;  %6600 = vmatprep.subr.bf16.mxu1 %v7353_v3 }
  0x2a   :  { %5971 = vmatmul.mubr.f32.vlgmr.msra.gmra.mrb[0].mxu0 %v7496_v49  ;;  %6049 = vmatmul.mubr.f32.vlgmr.msra.gmra.mrb[0].mxu1 %v7496_v49  ;;  %v1143_v58 = vand.u32 4294901760, %v1142_v37  ;;  %v6649_v37 = vpack.c.bf16 %v7685_v51, %v7680_v50  ;;  %v5413_v50 = vld [vmem:[%s9077_s6 + $0x50] sm:$0xff]  ;;  %v5414_v51 = vld [vmem:[%s9077_s6 + $0x58] sm:$0xff] }
  0x2b   :  { %6566 = vmatpush3.bf16.msra.mxu0 %v7432_v16  ;;  %6602 = vmatpush3.bf16.msra.mxu1 %v7441_v20 }
  0x2c   :  { %6567 = vmatprep.subr.bf16.mxu0 %v7353_v3  ;;  %6603 = vmatprep.subr.bf16.mxu1 %v7353_v3  ;;  %v6631_v62 = vpack.c.bf16 %v1150_v59, %v1143_v58  ;;  %v6667_v58 = vpack.c.bf16 %v1148_v46, %v1141_v45  ;;  %v6670_v59 = vpack.c.bf16 %v1162_v54, %v1155_v53  ;;  %v5412_v45 = vld [vmem:[%s9077_s6 + $0x48] sm:$0xff]  ;;  %v1606_v46 = vand.u32 4294901760, %v5411_v26 }
  0x2d   :  { %5983 = vmatprep.mubr.msk.f32.mxu0 %vm7354_vm0, %v9100_v15  ;;  %6061 = vmatprep.mubr.msk.f32.mxu1 %vm7354_vm0, %v9100_v15 }
  0x2f   :  { %6569 = vmatpush3.bf16.msra.mxu0 %v7447_v23  ;;  %6605 = vmatpush3.bf16.msra.mxu1 %v7467_v33 }
  0x30   :  { %5981 = vmatprep.subr.mxu0 %v9100_v15  ;;  %6059 = vmatprep.subr.mxu1 %v9100_v15 }
  0x33   :  { %5982 = vmatpush3.msra.mxu0 %v7462_v30  ;;  %6060 = vmatpush3.msra.mxu1 %v7473_v36 }
  0x34   :  { %6570 = vmatprep.subr.bf16.mxu0 %v7353_v3  ;;  %6606 = vmatprep.subr.bf16.mxu1 %v7353_v3 }
  0x35   :  { %5984 = vmatmul.mubr.f32.vlgmr.msra.gmra.mrb[0].mxu0 %v7519_v57  ;;  %6062 = vmatmul.mubr.f32.vlgmr.msra.gmra.mrb[0].mxu1 %v7519_v57 }
  0x36   :  { %6572 = vmatpush3.bf16.msra.mxu0 %v6571_v38  ;;  %6608 = vmatpush3.bf16.msra.mxu1 %v6607_v39 }
  0x37   :  { %6573 = vmatprep.subr.bf16.mxu0 %v7353_v3  ;;  %6609 = vmatprep.subr.bf16.mxu1 %v7353_v3 }
  0x38   :  { %5996 = vmatprep.mubr.msk.f32.mxu0 %vm7354_vm0, %v9100_v15  ;;  %6074 = vmatprep.mubr.msk.f32.mxu1 %vm7354_vm0, %v9100_v15 }
  0x3a   :  { %6575 = vmatpush3.bf16.msra.mxu0 %v6574_v22  ;;  %6611 = vmatpush3.bf16.msra.mxu1 %v6610_v31 }
  0x3b   :  { %5994 = vmatprep.subr.mxu0 %v9100_v15  ;;  %6072 = vmatprep.subr.mxu1 %v9100_v15 }
  0x3e   :  { %5995 = vmatpush3.msra.mxu0 %v151_v5  ;;  %6073 = vmatpush3.msra.mxu1 %v654_v6  ;;  %v1077_v6 = vand.u32 4294901760, %v1050_v4 }
  0x3f   :  { %6576 = vmatprep.subr.bf16.mxu0 %v7353_v3  ;;  %6612 = vmatprep.subr.bf16.mxu1 %v7353_v3 }
  0x40   :  { %5997 = vmatmul.mubr.f32.vlgmr.msra.gmra.mrb[0].mxu0 %v7485_v41  ;;  %6075 = vmatmul.mubr.f32.vlgmr.msra.gmra.mrb[0].mxu1 %v7485_v41  ;;  %v1189_v9 = vsub.f32 %v1050_v4, %v1077_v6  ;;  %v1627_v4 = vand.u32 4294901760, %v5418_v1 }
  0x41   :  { %6578 = vmatpush3.bf16.msra.mxu0 %v7432_v16  ;;  %6614 = vmatpush3.bf16.msra.mxu1 %v7441_v20  ;;  %v1156_v16 = vsub.f32 %v7664_v47, %v1155_v53  ;;  %v1163_v20 = vsub.f32 %v7669_v48, %v1162_v54  ;;  %v1609_v47 = vand.u32 4294901760, %v5412_v45  ;;  %v1612_v53 = vand.u32 4294901760, %v5413_v50 }
  0x42   :  { %6579 = vmatprep.subr.bf16.mxu0 %v7353_v3  ;;  %6615 = vmatprep.subr.bf16.mxu1 %v7353_v3  ;;  %v1190_v11 = vand.u32 4294901760, %v1189_v9  ;;  %v1615_v54 = vand.u32 4294901760, %v5414_v51 }
  0x43   :  { %6009 = vmatprep.mubr.msk.f32.mxu0 %vm7354_vm0, %v9100_v15  ;;  %6087 = vmatprep.mubr.msk.f32.mxu1 %vm7354_vm0, %v9100_v15  ;;  %v1157_v63 = vand.u32 4294901760, %v1156_v16  ;;  %v1164_v0 = vand.u32 4294901760, %v1163_v20  ;;  %v7831_v48 = vpack.c.bf16 %v1609_v47, %v1606_v46  ;;  %v5416_v16 = vld [vmem:[%s9077_s6 + $0x68] sm:$0xff]  ;;  %v1618_v20 = vand.u32 4294901760, %v5415_v56 }
  0x44   :  { %v1191_v13 = vsub.f32 %v1189_v9, %v1190_v11  ;;  %v7841_v55 = vpack.c.bf16 %v1615_v54, %v1612_v53 }
  0x45   :  { %6581 = vmatpush3.bf16.msra.mxu0 %v7447_v23  ;;  %6617 = vmatpush3.bf16.msra.mxu1 %v7467_v33  ;;  %v6634_v23 = vpack.c.bf16 %v1164_v0, %v1157_v63  ;;  %v1171_v33 = vand.u32 4294901760, %v1170_v60  ;;  %v1621_v60 = vand.u32 4294901760, %v5416_v16  ;;  %v5417_v0 = vld [vmem:[%s9077_s6 + $0x70] sm:$0xff] }
  0x46   :  { %6007 = vmatprep.subr.mxu0 %v9100_v15  ;;  %6085 = vmatprep.subr.mxu1 %v9100_v15  ;;  %v1192_v19 = vand.u32 4294901760, %v1191_v13 }
  0x47   :  { %v7855_v63 = vpack.c.bf16 %v1621_v60, %v1618_v20 }
  0x49   :  { %6008 = vmatpush3.msra.mxu0 %v7462_v30  ;;  %6086 = vmatpush3.msra.mxu1 %v7473_v36  ;;  %v6637_v30 = vpack.c.bf16 %v1178_v2, %v1171_v33  ;;  %v1049_v36 = vld [vmem:[%s9077_s6 + $0x30] sm:$0xff]  ;;  %v7865_v33 = vsub.f32 %v5414_v51, %v1615_v54  ;;  %v7868_v2 = vsub.f32 %v5415_v56, %v1618_v20  ;;  %v5420_v20 = vld [vmem:[%s9077_s6 + $0x88] sm:$0xff] }
  0x4a   :  { %6010 = vmatmul.mubr.f32.vlgmr.msra.gmra.mrb[0].mxu0 %v7485_v41  ;;  %6088 = vmatmul.mubr.f32.vlgmr.msra.gmra.mrb[0].mxu1 %v7485_v41  ;;  %v1074_v5 = vand.u32 4294901760, %v1049_v36 }
  0x4b   :  { %6630 = vmatprep.subr.bf16.mxu0 %v7353_v3  ;;  %6618 = vmatprep.subr.bf16.mxu1 %v7353_v3 }
  0x4c   :  { %6632 = vmatpush3.bf16.msra.mxu0 %v6631_v62  ;;  %6620 = vmatpush3.bf16.msra.mxu1 %v7720_v61  ;;  %v1182_v8 = vsub.f32 %v1049_v36, %v1074_v5  ;;  %v7763_v29 = vpack.c.bf16 %v1077_v6, %v1074_v5  ;;  %v7853_v62 = vsub.f32 %v5412_v45, %v1609_v47  ;;  %v1624_v36 = vand.u32 4294901760, %v5417_v0 }
  0x4d   :  { %6633 = vmatprep.subr.bf16.mxu0 %v7353_v3  ;;  %6621 = vmatprep.subr.bf16.mxu1 %v7353_v3 }
  0x4e   :  { %6125 = vmatprep.mubr.msk.f32.mxu0 %vm7354_vm0, %v9100_v15  ;;  %6106 = vmatprep.mubr.msk.f32.mxu1 %vm7354_vm0, %v9100_v15  ;;  %v1183_v10 = vand.u32 4294901760, %v1182_v8  ;;  %v6652_v38 = vpack.c.bf16 %v1189_v9, %v1182_v8  ;;  %v1698_v6 = vand.u32 4294901760, %v7853_v62  ;;  %v7877_v9 = vsub.f32 %v5417_v0, %v1624_v36 }
  0x50   :  { %6635 = vmatpush3.bf16.msra.mxu0 %v6634_v23  ;;  %v1184_v12 = vsub.f32 %v1182_v8, %v1183_v10  ;;  %6623 = vmatpush3.bf16.msra.mxu1 %v7750_v27  ;;  %v6676_v39 = vpack.c.bf16 %v1190_v11, %v1183_v10  ;;  %v7863_v23 = vsub.f32 %v5413_v50, %v1612_v53 }
  0x51   :  { %6636 = vmatprep.subr.bf16.mxu0 %v7353_v3  ;;  %6624 = vmatprep.subr.bf16.mxu1 %v7353_v3  ;;  %v7875_v8 = vpack.c.bf16 %v1627_v4, %v1624_v36  ;;  %v7879_v10 = vsub.f32 %v5418_v1, %v1627_v4 }
  0x52   :  { %v1185_v14 = vand.u32 4294901760, %v1184_v12  ;;  %v1699_v12 = vsub.f32 %v7853_v62, %v1698_v6 }
  0x54   :  { %6638 = vmatpush3.bf16.msra.mxu0 %v6637_v30  ;;  %v6640_v24 = vpack.c.bf16 %v1192_v19, %v1185_v14  ;;  %6626 = vmatpush3.bf16.msra.mxu1 %v7759_v28  ;;  %v7870_v30 = vsub.f32 %v5416_v16, %v1621_v60  ;;  %v1705_v14 = vand.u32 4294901760, %v7863_v23  ;;  %v1712_v19 = vand.u32 4294901760, %v7865_v33  ;;  %v5419_v16 = vld [vmem:[%s9077_s6 + $0x80] sm:$0xff] }
  0x55   :  { %6639 = vmatprep.subr.bf16.mxu0 %v7353_v3  ;;  %6627 = vmatprep.subr.bf16.mxu1 %v7353_v3  ;;  %v2156_v60 = vand.u32 4294901760, %v5419_v16 }
  0x56   :  { %v6721_v45 = vpack.c.bf16 %v7870_v30, %v7868_v2  ;;  %v6742_v50 = vpack.c.bf16 %v1712_v19, %v1705_v14 }
  0x57   :  { %v7913_v0 = vsub.f32 %v5419_v16, %v2156_v60 }
  0x58   :  { %6641 = vmatpush3.bf16.msra.mxu0 %v6640_v24  ;;  %6629 = vmatpush3.bf16.msra.mxu1 %v7763_v29  ;;  %v1700_v24 = vand.u32 4294901760, %v1699_v12 }
  0x59   :  { %6642 = vmatprep.subr.bf16.mxu0 %v7353_v3  ;;  %6690 = vmatprep.subr.bf16.mxu1 %v7353_v3 }
 0x11d   :  { %v534_v40 = vpop.f32.mrb[0].mxu0  ;;  %v1037_v17 = vpop.f32.mrb[0].mxu1 }
 0x11e   :  { %vm1041_vm3 = vcmp.gt.f32.partialorder %v1037_v17, 0.0  ;;  %v6011_v18 = vpop.f32.mrb[1].mxu0  ;;  %v6089_v21 = vpop.f32.mrb[1].mxu1  ;;  %v1726_v17 = vand.u32 4294901760, %v7870_v30 }
 0x11f   :  { %v7767_v22 = vsel %vm1041_vm3, %v534_v40, -1e+09  ;;  %v1719_v40 = vand.u32 4294901760, %v7868_v2 }
 0x120   :  { %v1053_v31 = vsel %vm1051_vm2, %v7767_v22, 0 }
 0x121   :  { %v1128_v34 = vand.u32 4294901760, %v1053_v31  ;;  %v1720_v21 = vsub.f32 %v7868_v2, %v1719_v40  ;;  %v6745_v51 = vpack.c.bf16 %v1726_v17, %v1719_v40 }
 0x123   :  { %v1129_v35 = vsub.f32 %v1053_v31, %v1128_v34  ;;  %6126 = vmatmul.mubr.f32.vlgmr.msra.gmra.mrb[2].mxu0 %v1128_v34  ;;  %v1727_v31 = vsub.f32 %v7870_v30, %v1726_v17 }
 0x124   :  { %6644 = vmatpush3.bf16.msra.mxu0 %v6643_v32  ;;  %6144 = vmatprep.mubr.msk.f32.mxu0 %vm7354_vm0, %v9100_v15  ;;  %v1721_v32 = vand.u32 4294901760, %v1720_v21 }
 0x125   :  { %v1130_v43 = vand.u32 4294901760, %v1129_v35  ;;  %6645 = vmatprep.subr.bf16.mxu0 %v7353_v3 }
 0x127   :  { %v1131_v44 = vsub.f32 %v1129_v35, %v1130_v43 }
 0x128   :  { %6647 = vmatpush3.bf16.msra.mxu0 %v6646_v42  ;;  %v1740_v42 = vand.u32 4294901760, %v7879_v10 }
 0x129   :  { %6648 = vmatprep.subr.bf16.mxu0 %v7353_v3  ;;  %v1132_v52 = vand.u32 4294901760, %v1131_v44 }
 0x12b   :  { %6107 = vmatmul.mubr.f32.vlgmr.msra.gmra.mrb[2].mxu1 %v1132_v52 }
 0x12c   :  { %6650 = vmatpush3.bf16.msra.mxu0 %v6649_v37  ;;  %6220 = vmatprep.mubr.msk.f32.mxu1 %vm7354_vm0, %v9100_v15  ;;  %v1741_v37 = vsub.f32 %v7879_v10, %v1740_v42 }
 0x12d   :  { %6651 = vmatprep.subr.bf16.mxu0 %v7353_v3  ;;  %6692 = vmatpush3.bf16.msra.mxu1 %v7831_v48 }
 0x12e   :  { %6693 = vmatprep.subr.bf16.mxu1 %v7353_v3 }
 0x130   :  { %6653 = vmatpush3.bf16.msra.mxu0 %v6652_v38 }
 0x131   :  { %6654 = vmatprep.subr.bf16.mxu0 %v7353_v3  ;;  %6695 = vmatpush3.bf16.msra.mxu1 %v7841_v55 }
 0x132   :  { %6696 = vmatprep.subr.bf16.mxu1 %v7353_v3 }
 0x133   :  { %6145 = vmatmul.mubr.f32.vlgmr.msra.gmra.mrb[2].mxu0 %v1129_v35  ;;  %v1733_v35 = vand.u32 4294901760, %v7877_v9 }
 0x134   :  { %6656 = vmatpush3.bf16.msra.mxu0 %v7720_v61  ;;  %6163 = vmatprep.mubr.msk.f32.mxu0 %vm7354_vm0, %v9100_v15 }
 0x135   :  { %6657 = vmatprep.subr.bf16.mxu0 %v7353_v3  ;;  %6698 = vmatpush3.bf16.msra.mxu1 %v7855_v63  ;;  %v1734_v44 = vsub.f32 %v7877_v9, %v1733_v35  ;;  %v6748_v56 = vpack.c.bf16 %v1740_v42, %v1733_v35 }
 0x136   :  { %6699 = vmatprep.subr.bf16.mxu1 %v7353_v3 }
 0x137   :  { %v1735_v52 = vand.u32 4294901760, %v1734_v44 }
 0x138   :  { %6659 = vmatpush3.bf16.msra.mxu0 %v7750_v27 }
 0x139   :  { %6660 = vmatprep.subr.bf16.mxu0 %v7353_v3  ;;  %6701 = vmatpush3.bf16.msra.mxu1 %v7875_v8 }
 0x13a   :  { %6702 = vmatprep.subr.bf16.mxu1 %v7353_v3 }
 0x13c   :  { %6662 = vmatpush3.bf16.msra.mxu0 %v7759_v28 }
 0x13d   :  { %6663 = vmatprep.subr.bf16.mxu0 %v7353_v3 }
 0x140   :  { %6665 = vmatpush3.bf16.msra.mxu0 %v7763_v29 }
 0x141   :  { %6666 = vmatprep.subr.bf16.mxu0 %v7353_v3 }
 0x143   :  { %6164 = vmatmul.mubr.f32.vlgmr.msra.gmra.mrb[2].mxu0 %v1130_v43 }
 0x144   :  { %6668 = vmatpush3.bf16.msra.mxu0 %v6667_v58  ;;  %6182 = vmatprep.mubr.msk.f32.mxu0 %vm7354_vm0, %v9100_v15  ;;  %v1742_v58 = vand.u32 4294901760, %v1741_v37 }
 0x145   :  { %6669 = vmatprep.subr.bf16.mxu0 %v7353_v3 }
 0x148   :  { %6671 = vmatpush3.bf16.msra.mxu0 %v6670_v59  ;;  %v6712_v59 = vpack.c.bf16 %v1742_v58, %v1735_v52 }
 0x149   :  { %6672 = vmatprep.subr.bf16.mxu0 %v7353_v3 }
 0x14c   :  { %6674 = vmatpush3.bf16.msra.mxu0 %v6673_v25 }
 0x14d   :  { %6675 = vmatprep.subr.bf16.mxu0 %v7353_v3 }
 0x150   :  { %6677 = vmatpush3.bf16.msra.mxu0 %v6676_v39 }
 0x151   :  { %6678 = vmatprep.subr.bf16.mxu0 %v7353_v3 }
 0x153   :  { %6183 = vmatmul.mubr.f32.vlgmr.msra.gmra.mrb[2].mxu0 %v1128_v34 }
 0x154   :  { %6680 = vmatpush3.bf16.msra.mxu0 %v7720_v61  ;;  %6201 = vmatprep.mubr.msk.f32.mxu0 %vm7354_vm0, %v9100_v15  ;;  %v7851_v61 = vsub.f32 %v5411_v26, %v1606_v46  ;;  %v6718_v26 = vpack.c.bf16 %v7865_v33, %v7863_v23  ;;  %v6724_v46 = vpack.c.bf16 %v7879_v10, %v7877_v9 }
 0x155   :  { %6681 = vmatprep.subr.bf16.mxu0 %v7353_v3 }
 0x156   :  { %v1691_v5 = vand.u32 4294901760, %v7851_v61  ;;  %v6715_v25 = vpack.c.bf16 %v7853_v62, %v7851_v61 }
 0x158   :  { %6683 = vmatpush3.bf16.msra.mxu0 %v7750_v27  ;;  %v1692_v11 = vsub.f32 %v7851_v61, %v1691_v5  ;;  %v1706_v27 = vsub.f32 %v7863_v23, %v1705_v14  ;;  %v6739_v47 = vpack.c.bf16 %v1698_v6, %v1691_v5  ;;  %v2159_v61 = vand.u32 4294901760, %v5420_v20 }
 0x159   :  { %6684 = vmatprep.subr.bf16.mxu0 %v7353_v3 }
 0x15a   :  { %v1693_v13 = vand.u32 4294901760, %v1692_v11  ;;  %v1707_v38 = vand.u32 4294901760, %v1706_v27  ;;  %v7911_v62 = vpack.c.bf16 %v2159_v61, %v2156_v60  ;;  %v7915_v1 = vsub.f32 %v5420_v20, %v2159_v61  ;;  %v5425_v27 = vld [vmem:[%s9077_s6 + $0xb0] sm:$0xff] }
 0x15c   :  { %6686 = vmatpush3.bf16.msra.mxu0 %v7759_v28  ;;  %v1713_v28 = vsub.f32 %v7865_v33, %v1712_v19  ;;  %v2248_v40 = vand.u32 4294901760, %v7915_v1 }
 0x15d   :  { %6687 = vmatprep.subr.bf16.mxu0 %v7353_v3 }
 0x15e   :  { %v1714_v39 = vand.u32 4294901760, %v1713_v28  ;;  %v5426_v28 = vld [vmem:[%s9077_s6 + $0xb8] sm:$0xff] }
 0x160   :  { %6689 = vmatpush3.bf16.msra.mxu0 %v7763_v29  ;;  %v6703_v29 = vpack.c.bf16 %v1700_v24, %v1693_v13  ;;  %v6706_v18 = vpack.c.bf16 %v1714_v39, %v1707_v38  ;;  %v5424_v13 = vld [vmem:[%s9077_s6 + $0xa8] sm:$0xff]  ;;  %v2177_v38 = vand.u32 4294901760, %v5426_v28  ;;  %v2241_v39 = vand.u32 4294901760, %v7913_v0 }
 0x161   :  { %6762 = vmatprep.subr.bf16.mxu0 %v7353_v3  ;;  %v2171_v19 = vand.u32 4294901760, %v5424_v13 }
 0x162   :  { %v8004_v35 = vsub.f32 %v5426_v28, %v2177_v38  ;;  %v2242_v42 = vsub.f32 %v7913_v0, %v2241_v39 }
 0x163   :  { %6202 = vmatmul.mubr.f32.vlgmr.msra.gmra.mrb[2].mxu0 %v1128_v34  ;;  %v1728_v34 = vand.u32 4294901760, %v1727_v31  ;;  %v7998_v31 = vsub.f32 %v5424_v13, %v2171_v19 }
 0x164   :  { %6334 = vmatprep.mubr.msk.f32.mxu0 %vm7354_vm0, %v9100_v15  ;;  %6764 = vmatpush3.bf16.msra.mxu0 %v7911_v62  ;;  %v2243_v44 = vand.u32 4294901760, %v2242_v42  ;;  %v2290_v60 = vand.u32 4294901760, %v8004_v35 }
 0x165   :  { %v6709_v43 = vpack.c.bf16 %v1728_v34, %v1721_v32  ;;  %6765 = vmatprep.subr.bf16.mxu0 %v7353_v3 }
 0x1fe   :  { %v1134_v53 = vpop.f32.mrb[2].mxu1 }
 0x1ff   :  { %v6108_v54 = vpop.f32.mrb[3].mxu1 }
 0x236   :  { %v1588_v23 = vpop.f32.mrb[2].mxu0 }
 0x237   :  { %v7242_v33 = vadd.f32 %v1588_v23, %v1134_v53  ;;  %v6203_v2 = vpop.f32.mrb[3].mxu0 }
 0x239   :  { %v7920_v30 = vmax.f32 %v7767_v22, %v7242_v33  ;;  %v2291_v33 = vsub.f32 %v8004_v35, %v2290_v60 }
 0x23b   :  { %v1603_v36 = vsel %vm1051_vm2, %v7920_v30, 0 }
 0x23c   :  { %v1678_v4 = vand.u32 4294901760, %v1603_v36 }
 0x23e   :  { %v1679_v5 = vsub.f32 %v1603_v36, %v1678_v4  ;;  %v2292_v36 = vand.u32 4294901760, %v2291_v33 }
 0x240   :  { %v1680_v6 = vand.u32 4294901760, %v1679_v5 }
 0x242   :  { %v1681_v9 = vsub.f32 %v1679_v5, %v1680_v6 }
 0x244   :  { %v1682_v10 = vand.u32 4294901760, %v1681_v9 }
 0x246   :  { %6221 = vmatmul.mubr.f32.vlgmr.msra.gmra.mrb[4].mxu1 %v1682_v10 }
 0x247   :  { %6704 = vmatpush3.bf16.msra.mxu1 %v6703_v29  ;;  %6239 = vmatprep.mubr.msk.f32.mxu1 %vm7354_vm0, %v9100_v15  ;;  %v2174_v29 = vand.u32 4294901760, %v5425_v27 }
 0x248   :  { %6705 = vmatprep.subr.bf16.mxu1 %v7353_v3 }
 0x249   :  { %v8000_v32 = vpack.c.bf16 %v2177_v38, %v2174_v29  ;;  %v8002_v34 = vsub.f32 %v5425_v27, %v2174_v29 }
 0x24b   :  { %6707 = vmatpush3.bf16.msra.mxu1 %v6706_v18  ;;  %v2283_v20 = vand.u32 4294901760, %v8002_v34  ;;  %v6796_v10 = vpack.c.bf16 %v8004_v35, %v8002_v34  ;;  %v5434_v35 = vld [vmem:[%s9077_s6 + $0xf8] sm:$0xff] }
 0x24c   :  { %6708 = vmatprep.subr.bf16.mxu1 %v7353_v3 }
 0x24d   :  { %v2284_v23 = vsub.f32 %v8002_v34, %v2283_v20  ;;  %v5433_v34 = vld [vmem:[%s9077_s6 + $0xf0] sm:$0xff] }
 0x24f   :  { %6710 = vmatpush3.bf16.msra.mxu1 %v6709_v43  ;;  %v2249_v43 = vsub.f32 %v7915_v1, %v2248_v40  ;;  %v2285_v2 = vand.u32 4294901760, %v2284_v23 }
 0x250   :  { %6711 = vmatprep.subr.bf16.mxu1 %v7353_v3 }
 0x251   :  { %v2250_v58 = vand.u32 4294901760, %v2249_v43 }
 0x253   :  { %6713 = vmatpush3.bf16.msra.mxu1 %v6712_v59 }
 0x254   :  { %6714 = vmatprep.subr.bf16.mxu1 %v7353_v3 }
 0x256   :  { %6240 = vmatmul.mubr.f32.vlgmr.msra.gmra.mrb[4].mxu1 %v1678_v4 }
 0x257   :  { %6716 = vmatpush3.bf16.msra.mxu1 %v6715_v25  ;;  %6258 = vmatprep.mubr.msk.f32.mxu1 %vm7354_vm0, %v9100_v15 }
 0x258   :  { %6717 = vmatprep.subr.bf16.mxu1 %v7353_v3 }
 0x25b   :  { %6719 = vmatpush3.bf16.msra.mxu1 %v6718_v26  ;;  %v6775_v26 = vpack.c.bf16 %v2250_v58, %v2243_v44 }
 0x25c   :  { %6720 = vmatprep.subr.bf16.mxu1 %v7353_v3 }
 0x25f   :  { %6722 = vmatpush3.bf16.msra.mxu1 %v6721_v45 }
 0x260   :  { %6723 = vmatprep.subr.bf16.mxu1 %v7353_v3 }
 0x263   :  { %6725 = vmatpush3.bf16.msra.mxu1 %v6724_v46 }
 0x264   :  { %6726 = vmatprep.subr.bf16.mxu1 %v7353_v3 }
 0x266   :  { %6259 = vmatmul.mubr.f32.vlgmr.msra.gmra.mrb[4].mxu1 %v1679_v5  ;;  %v6787_v5 = vpack.c.bf16 %v7915_v1, %v7913_v0 }
 0x267   :  { %6728 = vmatpush3.bf16.msra.mxu1 %v7831_v48  ;;  %6277 = vmatprep.mubr.msk.f32.mxu1 %vm7354_vm0, %v9100_v15 }
 0x268   :  { %6729 = vmatprep.subr.bf16.mxu1 %v7353_v3 }
 0x26b   :  { %6731 = vmatpush3.bf16.msra.mxu1 %v7841_v55 }
 0x26c   :  { %6732 = vmatprep.subr.bf16.mxu1 %v7353_v3 }
 0x26f   :  { %6734 = vmatpush3.bf16.msra.mxu1 %v7855_v63 }
 0x270   :  { %6735 = vmatprep.subr.bf16.mxu1 %v7353_v3 }
 0x273   :  { %6737 = vmatpush3.bf16.msra.mxu1 %v7875_v8 }
 0x274   :  { %6738 = vmatprep.subr.bf16.mxu1 %v7353_v3 }
 0x276   :  { %6278 = vmatmul.mubr.f32.vlgmr.msra.gmra.mrb[4].mxu1 %v1680_v6 }
 0x277   :  { %6740 = vmatpush3.bf16.msra.mxu1 %v6739_v47  ;;  %6296 = vmatprep.mubr.msk.f32.mxu1 %vm7354_vm0, %v9100_v15 }
 0x278   :  { %6741 = vmatprep.subr.bf16.mxu1 %v7353_v3 }
 0x27b   :  { %6743 = vmatpush3.bf16.msra.mxu1 %v6742_v50  ;;  %v2276_v50 = vand.u32 4294901760, %v7998_v31 }
 0x27c   :  { %6744 = vmatprep.subr.bf16.mxu1 %v7353_v3 }
 0x27d   :  { %v2277_v54 = vsub.f32 %v7998_v31, %v2276_v50 }
 0x27f   :  { %6746 = vmatpush3.bf16.msra.mxu1 %v6745_v51  ;;  %v2278_v16 = vand.u32 4294901760, %v2277_v54 }
 0x280   :  { %6747 = vmatprep.subr.bf16.mxu1 %v7353_v3 }
 0x283   :  { %6749 = vmatpush3.bf16.msra.mxu1 %v6748_v56 }
 0x284   :  { %6750 = vmatprep.subr.bf16.mxu1 %v7353_v3 }
 0x286   :  { %6297 = vmatmul.mubr.f32.vlgmr.msra.gmra.mrb[4].mxu1 %v1678_v4 }
 0x287   :  { %6752 = vmatpush3.bf16.msra.mxu1 %v7831_v48  ;;  %6315 = vmatprep.mubr.msk.f32.mxu1 %vm7354_vm0, %v9100_v15  ;;  %v5421_v48 = vld [vmem:[%s9077_s6 + $0x90] sm:$0xff] }
 0x288   :  { %6753 = vmatprep.subr.bf16.mxu1 %v7353_v3  ;;  %v2162_v11 = vand.u32 4294901760, %v5421_v48 }
 0x28a   :  { %v7992_v17 = vsub.f32 %v5421_v48, %v2162_v11  ;;  %v6811_v48 = vpack.c.bf16 %v2248_v40, %v2241_v39  ;;  %v5430_v39 = vld [vmem:[%s9077_s6 + $0xd8] sm:$0xff] }
 0x28b   :  { %6755 = vmatpush3.bf16.msra.mxu1 %v7841_v55  ;;  %v5422_v55 = vld [vmem:[%s9077_s6 + $0x98] sm:$0xff] }
 0x28c   :  { %6756 = vmatprep.subr.bf16.mxu1 %v7353_v3  ;;  %v2255_v37 = vand.u32 4294901760, %v7992_v17 }
 0x28e   :  { %v2256_v59 = vsub.f32 %v7992_v17, %v2255_v37 }
 0x28f   :  { %6758 = vmatpush3.bf16.msra.mxu1 %v7855_v63  ;;  %v2165_v63 = vand.u32 4294901760, %v5422_v55 }
 0x290   :  { %6759 = vmatprep.subr.bf16.mxu1 %v7353_v3  ;;  %v2257_v45 = vand.u32 4294901760, %v2256_v59 }
 0x291   :  { %v7970_v12 = vpack.c.bf16 %v2165_v63, %v2162_v11  ;;  %v7994_v18 = vsub.f32 %v5422_v55, %v2165_v63  ;;  %v6820_v63 = vpack.c.bf16 %v2290_v60, %v2283_v20 }
 0x293   :  { %6761 = vmatpush3.bf16.msra.mxu1 %v7875_v8  ;;  %v5423_v8 = vld [vmem:[%s9077_s6 + $0xa0] sm:$0xff]  ;;  %6767 = vmatpush3.bf16.msra.mxu0 %v7970_v12  ;;  %v2262_v52 = vand.u32 4294901760, %v7994_v18  ;;  %v6790_v6 = vpack.c.bf16 %v7994_v18, %v7992_v17 }
 0x294   :  { %6834 = vmatprep.subr.bf16.mxu1 %v7353_v3  ;;  %v2168_v14 = vand.u32 4294901760, %v5423_v8  ;;  %6768 = vmatprep.subr.bf16.mxu0 %v7353_v3  ;;  %v5431_v17 = vld [vmem:[%s9077_s6 + $0xe0] sm:$0xff] }
 0x295   :  { %v2263_v25 = vsub.f32 %v7994_v18, %v2262_v52  ;;  %v6814_v55 = vpack.c.bf16 %v2262_v52, %v2255_v37  ;;  %v5432_v18 = vld [vmem:[%s9077_s6 + $0xe8] sm:$0xff] }
 0x296   :  { %6316 = vmatmul.mubr.f32.vlgmr.msra.gmra.mrb[4].mxu1 %v1678_v4  ;;  %v7980_v24 = vpack.c.bf16 %v2171_v19, %v2168_v14  ;;  %v7996_v21 = vsub.f32 %v5423_v8, %v2168_v14  ;;  %v6784_v4 = vpack.c.bf16 %v2292_v36, %v2285_v2 }
 0x297   :  { %6448 = vmatprep.mubr.msk.f32.mxu1 %vm7354_vm0, %v9100_v15  ;;  %v2264_v46 = vand.u32 4294901760, %v2263_v25 }
 0x298   :  { %6770 = vmatpush3.bf16.msra.mxu0 %v7980_v24  ;;  %v2269_v47 = vand.u32 4294901760, %v7996_v21  ;;  %v6793_v9 = vpack.c.bf16 %v7998_v31, %v7996_v21  ;;  %v2721_v31 = vand.u32 4294901760, %v5431_v17 }
 0x299   :  { %6771 = vmatprep.subr.bf16.mxu0 %v7353_v3  ;;  %v6778_v51 = vpack.c.bf16 %v2264_v46, %v2257_v45  ;;  %v2730_v45 = vand.u32 4294901760, %v5434_v35 }
 0x29a   :  { %v2270_v53 = vsub.f32 %v7996_v21, %v2269_v47  ;;  %v6817_v11 = vpack.c.bf16 %v2276_v50, %v2269_v47  ;;  %v2718_v21 = vand.u32 4294901760, %v5430_v39  ;;  %v8107_v58 = vsub.f32 %v5431_v17, %v2721_v31 }
 0x29b   :  { %v8117_v47 = vsub.f32 %v5434_v35, %v2730_v45  ;;  %v3249_v35 = vld [vmem:[%s9074_s3 + $0x10] sm:$0xff] }
 0x29c   :  { %6773 = vmatpush3.bf16.msra.mxu0 %v8000_v32  ;;  %v2271_v56 = vand.u32 4294901760, %v2270_v53  ;;  %v8105_v52 = vsub.f32 %v5430_v39, %v2718_v21 }
 0x29d   :  { %6774 = vmatprep.subr.bf16.mxu0 %v7353_v3 }
 0x29e   :  { %v6781_v61 = vpack.c.bf16 %v2278_v16, %v2271_v56  ;;  %v2815_v23 = vand.u32 4294901760, %v8105_v52 }
 0x2a0   :  { %v2816_v36 = vsub.f32 %v8105_v52, %v2815_v23 }
 0x369   :  { %v2138_v8 = vpop.f32.mrb[4].mxu1 }
 0x36a   :  { %v8031_v13 = vmax.f32 %v7920_v30, %v2138_v8  ;;  %v6317_v14 = vpop.f32.mrb[5].mxu1  ;;  %v5428_v30 = vld [vmem:[%s9077_s6 + $0xc8] sm:$0xff] }
 0x36b   :  { %v2712_v38 = vand.u32 4294901760, %v5428_v30  ;;  %v2843_v14 = vand.u32 4294901760, %v8117_v47 }
 0x36c   :  { %v2153_v0 = vsel %vm1051_vm2, %v8031_v13, 0 }
 0x36d   :  { %v2228_v1 = vand.u32 4294901760, %v2153_v0  ;;  %v8101_v44 = vsub.f32 %v5428_v30, %v2712_v38 }
 0x36f   :  { %v2229_v19 = vsub.f32 %v2153_v0, %v2228_v1  ;;  %v2801_v54 = vand.u32 4294901760, %v8101_v44 }
 0x371   :  { %v2230_v27 = vand.u32 4294901760, %v2229_v19  ;;  %v2802_v16 = vsub.f32 %v8101_v44, %v2801_v54 }
 0x373   :  { %v2231_v28 = vsub.f32 %v2229_v19, %v2230_v27  ;;  %v2803_v60 = vand.u32 4294901760, %v2802_v16 }
 0x375   :  { %v2232_v29 = vand.u32 4294901760, %v2231_v28 }
 0x377   :  { %6335 = vmatmul.mubr.f32.vlgmr.msra.gmra.mrb[4].mxu0 %v2232_v29 }
 0x378   :  { %6776 = vmatpush3.bf16.msra.mxu0 %v6775_v26  ;;  %6353 = vmatprep.mubr.msk.f32.mxu0 %vm7354_vm0, %v9100_v15  ;;  %v2727_v26 = vand.u32 4294901760, %v5433_v34 }
 0x379   :  { %6777 = vmatprep.subr.bf16.mxu0 %v7353_v3 }
 0x37a   :  { %v8115_v46 = vsub.f32 %v5433_v34, %v2727_v26 }
 0x37c   :  { %6779 = vmatpush3.bf16.msra.mxu0 %v6778_v51  ;;  %v8124_v51 = vpack.c.bf16 %v2730_v45, %v2727_v26  ;;  %v2836_v8 = vand.u32 4294901760, %v8115_v46  ;;  %v3252_v45 = vld [vmem:[%s9074_s3 + $0x28] sm:$0xff] }
 0x37d   :  { %6780 = vmatprep.subr.bf16.mxu0 %v7353_v3 }
 0x37e   :  { %v8165_v17 = vpack.c.bf16 %v2843_v14, %v2836_v8 }
 0x380   :  { %6782 = vmatpush3.bf16.msra.mxu0 %v6781_v61 }
 0x381   :  { %6783 = vmatprep.subr.bf16.mxu0 %v7353_v3 }
 0x384   :  { %6785 = vmatpush3.bf16.msra.mxu0 %v6784_v4 }
 0x385   :  { %6786 = vmatprep.subr.bf16.mxu0 %v7353_v3 }
 0x387   :  { %6354 = vmatmul.mubr.f32.vlgmr.msra.gmra.mrb[4].mxu0 %v2228_v1 }
 0x388   :  { %6788 = vmatpush3.bf16.msra.mxu0 %v6787_v5  ;;  %6372 = vmatprep.mubr.msk.f32.mxu0 %vm7354_vm0, %v9100_v15  ;;  %v2817_v5 = vand.u32 4294901760, %v2816_v36 }
 0x389   :  { %6789 = vmatprep.subr.bf16.mxu0 %v7353_v3 }
 0x38c   :  { %6791 = vmatpush3.bf16.msra.mxu0 %v6790_v6  ;;  %v2822_v6 = vand.u32 4294901760, %v8107_v58 }
 0x38d   :  { %6792 = vmatprep.subr.bf16.mxu0 %v7353_v3 }
 0x390   :  { %6794 = vmatpush3.bf16.msra.mxu0 %v6793_v9 }
 0x391   :  { %6795 = vmatprep.subr.bf16.mxu0 %v7353_v3 }
 0x394   :  { %6797 = vmatpush3.bf16.msra.mxu0 %v6796_v10 }
 0x395   :  { %6798 = vmatprep.subr.bf16.mxu0 %v7353_v3 }
 0x397   :  { %6373 = vmatmul.mubr.f32.vlgmr.msra.gmra.mrb[4].mxu0 %v2229_v19  ;;  %v2844_v19 = vsub.f32 %v8117_v47, %v2843_v14 }
 0x398   :  { %6800 = vmatpush3.bf16.msra.mxu0 %v7911_v62  ;;  %6391 = vmatprep.mubr.msk.f32.mxu0 %vm7354_vm0, %v9100_v15 }
 0x399   :  { %6801 = vmatprep.subr.bf16.mxu0 %v7353_v3  ;;  %v2845_v28 = vand.u32 4294901760, %v2844_v19 }
 0x39c   :  { %6803 = vmatpush3.bf16.msra.mxu0 %v7970_v12 }
 0x39d   :  { %6804 = vmatprep.subr.bf16.mxu0 %v7353_v3 }
 0x3a0   :  { %6806 = vmatpush3.bf16.msra.mxu0 %v7980_v24 }
 0x3a1   :  { %6807 = vmatprep.subr.bf16.mxu0 %v7353_v3 }
 0x3a4   :  { %6809 = vmatpush3.bf16.msra.mxu0 %v8000_v32 }
 0x3a5   :  { %6810 = vmatprep.subr.bf16.mxu0 %v7353_v3 }
 0x3a7   :  { %6392 = vmatmul.mubr.f32.vlgmr.msra.gmra.mrb[4].mxu0 %v2230_v27 }
 0x3a8   :  { %6812 = vmatpush3.bf16.msra.mxu0 %v6811_v48  ;;  %6410 = vmatprep.mubr.msk.f32.mxu0 %vm7354_vm0, %v9100_v15  ;;  %v2823_v48 = vsub.f32 %v8107_v58, %v2822_v6 }
 0x3a9   :  { %6813 = vmatprep.subr.bf16.mxu0 %v7353_v3 }
 0x3ac   :  { %6815 = vmatpush3.bf16.msra.mxu0 %v6814_v55 }
 0x3ad   :  { %6816 = vmatprep.subr.bf16.mxu0 %v7353_v3 }
 0x3b0   :  { %6818 = vmatpush3.bf16.msra.mxu0 %v6817_v11  ;;  %v2824_v11 = vand.u32 4294901760, %v2823_v48 }
 0x3b1   :  { %6819 = vmatprep.subr.bf16.mxu0 %v7353_v3 }
 0x3b4   :  { %6821 = vmatpush3.bf16.msra.mxu0 %v6820_v63 }
 0x3b5   :  { %6822 = vmatprep.subr.bf16.mxu0 %v7353_v3 }
 0x3b7   :  { %6411 = vmatmul.mubr.f32.vlgmr.msra.gmra.mrb[4].mxu0 %v2228_v1 }
 0x3b8   :  { %6824 = vmatpush3.bf16.msra.mxu0 %v7911_v62  ;;  %6429 = vmatprep.mubr.msk.f32.mxu0 %vm7354_vm0, %v9100_v15  ;;  %v5427_v62 = vld [vmem:[%s9077_s6 + $0xc0] sm:$0xff] }
 0x3b9   :  { %6825 = vmatprep.subr.bf16.mxu0 %v7353_v3 }
 0x3bc   :  { %6827 = vmatpush3.bf16.msra.mxu0 %v7970_v12  ;;  %v5429_v12 = vld [vmem:[%s9077_s6 + $0xd0] sm:$0xff] }
 0x3bd   :  { %6828 = vmatprep.subr.bf16.mxu0 %v7353_v3  ;;  %v2715_v40 = vand.u32 4294901760, %v5429_v12 }
 0x3bf   :  { %v8103_v37 = vsub.f32 %v5429_v12, %v2715_v40  ;;  %v8110_v59 = vpack.c.bf16 %v2718_v21, %v2715_v40  ;;  %v3250_v21 = vld [vmem:[%s9074_s3 + $0x18] sm:$0xff] }
 0x3c0   :  { %6830 = vmatpush3.bf16.msra.mxu0 %v7980_v24  ;;  %v2709_v24 = vand.u32 4294901760, %v5427_v62  ;;  %v3261_v34 = vand.u32 4294901760, %v3250_v21 }
 0x3c1   :  { %6831 = vmatprep.subr.bf16.mxu0 %v7353_v3  ;;  %v2808_v61 = vand.u32 4294901760, %v8103_v37  ;;  %v6862_v30 = vpack.c.bf16 %v8105_v52, %v8103_v37 }
 0x3c2   :  { %v8097_v42 = vpack.c.bf16 %v2712_v38, %v2709_v24  ;;  %v8099_v43 = vsub.f32 %v5427_v62, %v2709_v24  ;;  %v6868_v24 = vpack.c.bf16 %v8117_v47, %v8115_v46 }
 0x3c3   :  { %v2809_v2 = vsub.f32 %v8103_v37, %v2808_v61  ;;  %v8161_v39 = vpack.c.bf16 %v2815_v23, %v2808_v61  ;;  %v3256_v37 = vld [vmem:[%s9074_s3 + $0x48] sm:$0xff] }
 0x3c4   :  { %6833 = vmatpush3.bf16.msra.mxu0 %v8000_v32  ;;  %v2724_v32 = vand.u32 4294901760, %v5432_v18  ;;  %6836 = vmatpush3.bf16.msra.mxu1 %v8097_v42  ;;  %v2794_v53 = vand.u32 4294901760, %v8099_v43  ;;  %v6859_v62 = vpack.c.bf16 %v8101_v44, %v8099_v43 }
 0x3c5   :  { %6837 = vmatprep.subr.bf16.mxu1 %v7353_v3  ;;  %v2810_v4 = vand.u32 4294901760, %v2809_v2  ;;  %v8195_v2 = vsub.f32 %v3250_v21, %v3261_v34 }
 0x3c6   :  { %v8112_v25 = vsub.f32 %v5432_v18, %v2724_v32  ;;  %v8120_v50 = vpack.c.bf16 %v2724_v32, %v2721_v31  ;;  %v2795_v56 = vsub.f32 %v8099_v43, %v2794_v53  ;;  %v8159_v38 = vpack.c.bf16 %v2801_v54, %v2794_v53  ;;  %v3248_v18 = vld [vmem:[%s9074_s3 + $0x8] sm:$0xff]  ;;  %v3247_v31 = vld [vmem:[%s9074_s3] sm:$0xff]  ;;  %v3254_v53 = vld [vmem:[%s9074_s3 + $0x38] sm:$0xff] }
 0x3c7   :  { %6430 = vmatmul.mubr.f32.vlgmr.msra.gmra.mrb[4].mxu0 %v2228_v1  ;;  %v8141_v10 = vpack.c.bf16 %v2817_v5, %v2810_v4  ;;  %v2837_v1 = vsub.f32 %v8115_v46, %v2836_v8  ;;  %v3257_v32 = vand.u32 4294901760, %v3248_v18  ;;  %v3259_v26 = vand.u32 4294901760, %v3247_v31 }
 0x3c8   :  { %3331 = vmatprep.mubr.f32.mxu0 %v9100_v15  ;;  %6839 = vmatpush3.bf16.msra.mxu1 %v8110_v59  ;;  %v2796_v20 = vand.u32 4294901760, %v2795_v56  ;;  %v2829_v9 = vand.u32 4294901760, %v8112_v25  ;;  %v6865_v12 = vpack.c.bf16 %v8112_v25, %v8107_v58  ;;  %v3263_v54 = vand.u32 4294901760, %v3249_v35 }
 0x3c9   :  { %6840 = vmatprep.subr.bf16.mxu1 %v7353_v3  ;;  %v2838_v27 = vand.u32 4294901760, %v2837_v1  ;;  %v3265_v56 = vand.u32 4294901760, %v3252_v45  ;;  %v3269_v16 = vand.u32 4294901760, %v3254_v53  ;;  %v8191_v61 = vpack.c.bf16 %v3261_v34, %v3257_v32 }
 0x3ca   :  { %v8135_v33 = vpack.c.bf16 %v2803_v60, %v2796_v20  ;;  %v2830_v55 = vsub.f32 %v8112_v25, %v2829_v9  ;;  %v8163_v40 = vpack.c.bf16 %v2829_v9, %v2822_v6  ;;  %v3251_v20 = vld [vmem:[%s9074_s3 + $0x20] sm:$0xff]  ;;  %v3253_v60 = vld [vmem:[%s9074_s3 + $0x30] sm:$0xff]  ;;  %v8193_v23 = vsub.f32 %v3248_v18, %v3257_v32 }
 0x3cb   :  { %v6856_v29 = vpack.c.bf16 %v2845_v28, %v2838_v27  ;;  %v8197_v36 = vsub.f32 %v3247_v31, %v3259_v26  ;;  %v8199_v4 = vpack.c.bf16 %v3263_v54, %v3259_v26  ;;  %v8201_v5 = vsub.f32 %v3249_v35, %v3263_v54  ;;  %6907 = vmatprep.subr.bf16.mxu0 %v8191_v61  ;;  %v3255_v25 = vld [vmem:[%s9074_s3 + $0x40] sm:$0xff] }
 0x3cc   :  { %6842 = vmatpush3.bf16.msra.mxu1 %v8120_v50  ;;  %v2831_v63 = vand.u32 4294901760, %v2830_v55  ;;  %v8203_v6 = vpack.c.bf16 %v3269_v16, %v3265_v56  ;;  %v8205_v9 = vsub.f32 %v3252_v45, %v3265_v56  ;;  %v8208_v48 = vsub.f32 %v3254_v53, %v3269_v16  ;;  %v3826_v16 = vld [vmem:[%s9075_s4] sm:$0xff] }
 0x3cd   :  { %6843 = vmatprep.subr.bf16.mxu1 %v7353_v3  ;;  %v3267_v55 = vand.u32 4294901760, %v3251_v20  ;;  %6909 = vmatpush1.bf16.msra.mxu0 %v8199_v4  ;;  %v9091_v43 = vand.u32 4294901760, %v8201_v5 }
 0x3ce   :  { %v8147_v0 = vpack.c.bf16 %v2831_v63, %v2824_v11  ;;  %v3271_v11 = vand.u32 4294901760, %v3253_v60  ;;  %6911 = vmatprep.subr.bf16.mxu0 %v8203_v6 }
 0x3cf   :  { %v8214_v8 = vsub.f32 %v3251_v20, %v3267_v55  ;;  %v3364_v58 = vsub.f32 %v8201_v5, %v9091_v43  ;;  %v3828_v20 = vld [vmem:[%s9075_s4 + $0x10] sm:$0xff] }
 0x3d0   :  { %6845 = vmatpush3.bf16.msra.mxu1 %v8124_v51  ;;  %v8212_v63 = vpack.c.bf16 %v3271_v11, %v3267_v55  ;;  %v8216_v14 = vsub.f32 %v3253_v60, %v3271_v11  ;;  %v3847_v11 = vand.u32 4294901760, %v3826_v16 }
 0x3d1   :  { %6846 = vmatprep.subr.bf16.mxu1 %v7353_v3 }
 0x3d2   :  { %6913 = vmatpush1.bf16.msra.mxu0 %v8212_v63 }
 0x49a   :  { %v2688_v1 = vpop.f32.mrb[4].mxu0 }
 0x49b   :  { %v2692_v19 = vmax.f32 %v8031_v13, %v2688_v1  ;;  %v6431_v27 = vpop.f32.mrb[5].mxu0  ;;  %v3357_v13 = vand.u32 4294901760, %v8195_v2 }
 0x49c   :  { %v3851_v27 = vand.u32 4294901760, %v3828_v20 }
 0x49d   :  { %v2693_v28 = vsub.f32 %v7767_v22, %v2692_v19  ;;  %v3345_v22 = vand.u32 4294901760, %v8193_v23 }
 0x49f   :  { %v2694_v18 = vmul.f32 1.442695, %v2693_v28  ;;  %v3346_v44 = vsub.f32 %v8193_v23, %v3345_v22 }
 0x4a1   :  { %7325 = vpow2.f32 %v2694_v18  ;;  %v3347_v46 = vand.u32 4294901760, %v3346_v44 }
 0x4ab   :  { %v8221_v21 = vpop.eup %7325 }
 0x4ac   :  { %v2706_v31 = vsel %vm1051_vm2, %v8221_v21, 0 }
 0x4ad   :  { %v2781_v32 = vand.u32 4294901760, %v2706_v31 }
 0x4af   :  { %v2782_v34 = vsub.f32 %v2706_v31, %v2781_v32 }
 0x4b1   :  { %v2783_v35 = vand.u32 4294901760, %v2782_v34 }
 0x4b3   :  { %v2784_v26 = vsub.f32 %v2782_v34, %v2783_v35 }
 0x4b5   :  { %v2785_v45 = vand.u32 4294901760, %v2784_v26  ;;  %v8356_v26 = vpack.c.bf16 %v3851_v27, %v3847_v11 }
 0x4b7   :  { %6449 = vmatmul.mubr.f32.vlgmr.msra.gmra.mrb[6].mxu1 %v2785_v45 }
 0x4b8   :  { %6848 = vmatpush3.bf16.msra.mxu1 %v8135_v33  ;;  %6467 = vmatprep.mubr.msk.f32.mxu1 %vm7354_vm0, %v9100_v15 }
 0x4b9   :  { %6849 = vmatprep.subr.bf16.mxu1 %v7353_v3 }
 0x4bc   :  { %6851 = vmatpush3.bf16.msra.mxu1 %v8141_v10  ;;  %v3365_v10 = vand.u32 4294901760, %v3364_v58 }
 0x4bd   :  { %6852 = vmatprep.subr.bf16.mxu1 %v7353_v3 }
 0x4c0   :  { %6854 = vmatpush3.bf16.msra.mxu1 %v8147_v0  ;;  %v9084_v0 = vand.u32 4294901760, %v8208_v48 }
 0x4c1   :  { %6855 = vmatprep.subr.bf16.mxu1 %v7353_v3 }
 0x4c4   :  { %6857 = vmatpush3.bf16.msra.mxu1 %v6856_v29 }
 0x4c5   :  { %6858 = vmatprep.subr.bf16.mxu1 %v7353_v3 }
 0x4c7   :  { %6468 = vmatmul.mubr.f32.vlgmr.msra.gmra.mrb[6].mxu1 %v2781_v32 }
 0x4c8   :  { %6860 = vmatpush3.bf16.msra.mxu1 %v6859_v62  ;;  %6486 = vmatprep.mubr.msk.f32.mxu1 %vm7354_vm0, %v9100_v15 }
 0x4c9   :  { %6861 = vmatprep.subr.bf16.mxu1 %v7353_v3 }
 0x4cc   :  { %6863 = vmatpush3.bf16.msra.mxu1 %v6862_v30  ;;  %v9083_v30 = vand.u32 4294901760, %v8214_v8 }
 0x4cd   :  { %6864 = vmatprep.subr.bf16.mxu1 %v7353_v3 }
 0x4ce   :  { %v3376_v56 = vsub.f32 %v8214_v8, %v9083_v30 }
 0x4d0   :  { %6866 = vmatpush3.bf16.msra.mxu1 %v6865_v12  ;;  %v9082_v12 = vand.u32 4294901760, %v8216_v14  ;;  %v3377_v19 = vand.u32 4294901760, %v3376_v56  ;;  %v8383_v56 = vsub.f32 %v3826_v16, %v3847_v11  ;;  %v3841_v11 = vld [vmem:[%s9075_s4 + $0x78] sm:$0xff] }
 0x4d1   :  { %6867 = vmatprep.subr.bf16.mxu1 %v7353_v3 }
 0x4d2   :  { %v3388_v55 = vsub.f32 %v8216_v14, %v9082_v12 }
 0x4d4   :  { %6869 = vmatpush3.bf16.msra.mxu1 %v6868_v24  ;;  %v3389_v31 = vand.u32 4294901760, %v3388_v55  ;;  %v3837_v55 = vld [vmem:[%s9075_s4 + $0x58] sm:$0xff] }
 0x4d5   :  { %6870 = vmatprep.subr.bf16.mxu1 %v7353_v3 }
 0x4d6   :  { %v6920_v58 = vpack.c.bf16 %v3389_v31, %v3377_v19  ;;  %v3834_v19 = vld [vmem:[%s9075_s4 + $0x40] sm:$0xff]  ;;  %v6924_v31 = vpack.c.bf16 %v8201_v5, %v8197_v36 }
 0x4d7   :  { %6487 = vmatmul.mubr.f32.vlgmr.msra.gmra.mrb[6].mxu1 %v2782_v34  ;;  %v3833_v34 = vld [vmem:[%s9075_s4 + $0x38] sm:$0xff] }
 0x4d8   :  { %6872 = vmatpush3.bf16.msra.mxu1 %v8097_v42  ;;  %6505 = vmatprep.mubr.msk.f32.mxu1 %vm7354_vm0, %v9100_v15 }
 0x4d9   :  { %6873 = vmatprep.subr.bf16.mxu1 %v7353_v3 }
 0x4dc   :  { %6875 = vmatpush3.bf16.msra.mxu1 %v8110_v59 }
 0x4dd   :  { %6876 = vmatprep.subr.bf16.mxu1 %v7353_v3 }
 0x4e0   :  { %6878 = vmatpush3.bf16.msra.mxu1 %v8120_v50 }
 0x4e1   :  { %6879 = vmatprep.subr.bf16.mxu1 %v7353_v3 }
 0x4e4   :  { %6881 = vmatpush3.bf16.msra.mxu1 %v8124_v51 }
 0x4e5   :  { %6882 = vmatprep.subr.bf16.mxu1 %v7353_v3 }
 0x4e7   :  { %6506 = vmatmul.mubr.f32.vlgmr.msra.gmra.mrb[6].mxu1 %v2783_v35 }
 0x4e8   :  { %6884 = vmatpush3.bf16.msra.mxu1 %v8159_v38  ;;  %6524 = vmatprep.mubr.msk.f32.mxu1 %vm7354_vm0, %v9100_v15  ;;  %v3382_v38 = vsub.f32 %v8208_v48, %v9084_v0 }
 0x4e9   :  { %6885 = vmatprep.subr.bf16.mxu1 %v7353_v3 }
 0x4ec   :  { %6887 = vmatpush3.bf16.msra.mxu1 %v8161_v39  ;;  %v3827_v39 = vld [vmem:[%s9075_s4 + $0x8] sm:$0xff] }
 0x4ed   :  { %6888 = vmatprep.subr.bf16.mxu1 %v7353_v3  ;;  %v3845_v53 = vand.u32 4294901760, %v3827_v39 }
 0x4f0   :  { %6890 = vmatpush3.bf16.msra.mxu1 %v8163_v40  ;;  %v3829_v40 = vld [vmem:[%s9075_s4 + $0x18] sm:$0xff] }
 0x4f1   :  { %6891 = vmatprep.subr.bf16.mxu1 %v7353_v3  ;;  %v3849_v54 = vand.u32 4294901760, %v3829_v40 }
 0x4f3   :  { %v8343_v1 = vpack.c.bf16 %v3849_v54, %v3845_v53 }
 0x4f4   :  { %6893 = vmatpush3.bf16.msra.mxu1 %v8165_v17 }
 0x4f5   :  { %6894 = vmatprep.subr.bf16.mxu1 %v7353_v3 }
 0x4f7   :  { %6525 = vmatmul.mubr.f32.vlgmr.msra.gmra.mrb[6].mxu1 %v2781_v32 }
 0x4f8   :  { %6896 = vmatpush3.bf16.msra.mxu1 %v8097_v42  ;;  %6543 = vmatprep.mubr.msk.f32.mxu1 %vm7354_vm0, %v9100_v15  ;;  %v9092_v42 = vand.u32 4294901760, %v8197_v36 }
 0x4f9   :  { %6897 = vmatprep.subr.bf16.mxu1 %v7353_v3 }
 0x4fa   :  { %v3352_v52 = vsub.f32 %v8197_v36, %v9092_v42 }
 0x4fc   :  { %6899 = vmatpush3.bf16.msra.mxu1 %v8110_v59  ;;  %v8301_v59 = vand.u32 4294901760, %v3256_v37  ;;  %v3353_v33 = vand.u32 4294901760, %v3352_v52  ;;  %v3832_v52 = vld [vmem:[%s9075_s4 + $0x30] sm:$0xff] }
 0x4fd   :  { %6900 = vmatprep.subr.bf16.mxu1 %v7353_v3 }
 0x4fe   :  { %3274 = vmatprep.subr.mxu0 %v8301_v59  ;;  %v6916_v24 = vpack.c.bf16 %v3365_v10, %v3353_v33  ;;  %v8346_v28 = vsub.f32 %v3256_v37, %v8301_v59  ;;  %v3830_v37 = vld [vmem:[%s9075_s4 + $0x20] sm:$0xff] }
 0x500   :  { %6902 = vmatpush3.bf16.msra.mxu1 %v8120_v50  ;;  %v9089_v50 = vand.u32 4294901760, %v8205_v9  ;;  %v9081_v45 = vand.u32 4294901760, %v8346_v28 }
 0x501   :  { %6903 = vmatprep.subr.bf16.mxu1 %v7353_v3  ;;  %v3358_v3 = vsub.f32 %v8195_v2, %v3357_v13 }
 0x502   :  { %v3370_v62 = vsub.f32 %v8205_v9, %v9089_v50  ;;  %v3394_v33 = vsub.f32 %v8346_v28, %v9081_v45 }
 0x503   :  { %v3359_v47 = vand.u32 4294901760, %v3358_v3  ;;  %v3857_v3 = vand.u32 4294901760, %v3833_v34 }
 0x504   :  { %6905 = vmatpush3.bf16.msra.mxu1 %v8124_v51  ;;  %v8307_v51 = vand.u32 4294901760, %v3255_v25  ;;  %v3371_v17 = vand.u32 4294901760, %v3370_v62 }
 0x505   :  { %v6914_v29 = vpack.c.bf16 %v3359_v47, %v3347_v46  ;;  %6955 = vmatprep.subr.bf16.mxu1 %v8343_v1  ;;  %v3855_v46 = vand.u32 4294901760, %v3830_v37  ;;  %v3859_v47 = vand.u32 4294901760, %v3832_v52 }
 0x506   :  { %3276 = vmatpush1.msra.mxu0 %v8307_v51  ;;  %v8337_v60 = vsub.f32 %v3255_v25, %v8307_v51 }
 0x507   :  { %6544 = vmatmul.mubr.f32.vlgmr.msra.gmra.mrb[6].mxu1 %v2781_v32  ;;  %6915 = vmatprep.subr.bf16.mxu0 %v6914_v29  ;;  %v3831_v32 = vld [vmem:[%s9075_s4 + $0x28] sm:$0xff]  ;;  %v8374_v62 = vpack.c.bf16 %v3859_v47, %v3855_v46  ;;  %v8401_v16 = vsub.f32 %v3830_v37, %v3855_v46 }
 0x508   :  { %3925 = vmatprep.mubr.f32.mxu1 %v9100_v15  ;;  %3337 = vmatmul.mubr.f32.vlgmr.msra.gmra.mrb[6].mxu0 %v7531_v7  ;;  %v3383_v7 = vand.u32 4294901760, %v3382_v38  ;;  %v9080_v35 = vand.u32 4294901760, %v8337_v60  ;;  %v3853_v44 = vand.u32 4294901760, %v3831_v32  ;;  %v8379_v38 = vsub.f32 %v3827_v39, %v3845_v53  ;;  %v3836_v39 = vld [vmem:[%s9075_s4 + $0x50] sm:$0xff] }
 0x509   :  { %6917 = vmatpush1.bf16.msra.mxu0 %v6916_v24  ;;  %3457 = vmatprep.mubr.f32.mxu0 %v9100_v15  ;;  %9145 = vst [vmem:[#allocation5_spill] sm:$0xff] %v8374_v62  ;;  %v3835_v24 = vld [vmem:[%s9075_s4 + $0x48] sm:$0xff]  ;;  %v3867_v37 = vand.u32 4294901760, %v3836_v39 }
 0x50a   :  { %v6918_v18 = vpack.c.bf16 %v3383_v7, %v3371_v17  ;;  %v3400_v25 = vsub.f32 %v8337_v60, %v9080_v35  ;;  %6957 = vmatpush1.bf16.msra.mxu1 %v8356_v26  ;;  %v8372_v10 = vpack.c.bf16 %v3857_v3, %v3853_v44  ;;  %v8381_v17 = vsub.f32 %v3829_v40, %v3849_v54 }
 0x50b   :  { %v8385_v7 = vsub.f32 %v3828_v20, %v3851_v27  ;;  %v3395_v40 = vand.u32 4294901760, %v3394_v33  ;;  %v8397_v53 = vsub.f32 %v3831_v32, %v3853_v44  ;;  %v8399_v54 = vsub.f32 %v3833_v34, %v3857_v3  ;;  %v3839_v20 = vld [vmem:[%s9075_s4 + $0x68] sm:$0xff]  ;;  %v3838_v34 = vld [vmem:[%s9075_s4 + $0x60] sm:$0xff]  ;;  %v3840_v33 = vld [vmem:[%s9075_s4 + $0x70] sm:$0xff] }
 0x50c   :  { %6919 = vmatprep.subr.bf16.mxu0 %v6918_v18  ;;  %v3401_v29 = vand.u32 4294901760, %v3400_v25  ;;  %6959 = vmatprep.subr.bf16.mxu1 %v8372_v10  ;;  %v8410_v27 = vsub.f32 %v3832_v52, %v3859_v47  ;;  %v6922_v18 = vpack.c.bf16 %v8195_v2, %v8193_v23  ;;  %v3861_v32 = vand.u32 4294901760, %v3835_v24 }
 0x50d   :  { %6921 = vmatpush1.bf16.msra.mxu0 %v6920_v58  ;;  %v3865_v44 = vand.u32 4294901760, %v3837_v55  ;;  %v3863_v3 = vand.u32 4294901760, %v3834_v19  ;;  %v6926_v58 = vpack.c.bf16 %v8208_v48, %v8205_v9  ;;  %v6928_v25 = vpack.c.bf16 %v8216_v14, %v8214_v8 }
 0x50e   :  { %6961 = vmatpush1.bf16.msra.mxu1 %v8374_v62  ;;  %3396 = vmatprep.subr.mxu0 %v3395_v40  ;;  %v8421_v52 = vsub.f32 %v3835_v24, %v3861_v32  ;;  %v3869_v46 = vand.u32 4294901760, %v3839_v20  ;;  %v3873_v47 = vand.u32 4294901760, %v3841_v11  ;;  %v8437_v12 = vsub.f32 %v3836_v39, %v3867_v37 }
 0x50f   :  { %v8429_v40 = vpack.c.bf16 %v3865_v44, %v3861_v32  ;;  %v8431_v35 = vsub.f32 %v3837_v55, %v3865_v44  ;;  %v8433_v45 = vpack.c.bf16 %v3867_v37, %v3863_v3  ;;  %v8435_v24 = vsub.f32 %v3834_v19, %v3863_v3 }
 0x510   :  { %v8439_v30 = vpack.c.bf16 %v3873_v47, %v3869_v46  ;;  %v8441_v0 = vsub.f32 %v3839_v20, %v3869_v46  ;;  %v3875_v32 = vand.u32 4294901760, %v3840_v33  ;;  %v9087_v44 = vand.u32 4294901760, %v8379_v38 }
 0x511   :  { %3402 = vmatpush1.msra.mxu0 %v3401_v29  ;;  %9146 = vst [vmem:[#allocation6_spill] sm:$0xff] %v8429_v40  ;;  %9147 = vst [vmem:[#allocation7_spill] sm:$0xff] %v8433_v45  ;;  %v3871_v29 = vand.u32 4294901760, %v3838_v34  ;;  %6963 = vmatprep.subr.bf16.mxu1 %v8429_v40  ;;  %v9086_v19 = vand.u32 4294901760, %v8381_v17  ;;  %v9085_v39 = vand.u32 4294901760, %v8383_v56  ;;  %v9088_v20 = vand.u32 4294901760, %v8385_v7 }
 0x512   :  { %6923 = vmatprep.subr.bf16.mxu0 %v6922_v18  ;;  %3459 = vmatmul.mubr.f32.vlgmr.msra.gmra.mrb[6].mxu0 %v7485_v41  ;;  %9148 = vst [vmem:[#allocation8_spill] sm:$0xff] %v8439_v30  ;;  %v8444_v18 = vsub.f32 %v3841_v11, %v3873_v47  ;;  %v8457_v11 = vsub.f32 %v3840_v33, %v3875_v32  ;;  %v9090_v3 = vand.u32 4294901760, %v8397_v53  ;;  %v9095_v47 = vand.u32 4294901760, %v8399_v54 }
 0x513   :  { %6925 = vmatpush1.bf16.msra.mxu0 %v6924_v31  ;;  %v8446_v55 = vsub.f32 %v3838_v34, %v3871_v29  ;;  %6965 = vmatpush1.bf16.msra.mxu1 %v8433_v45  ;;  %v8455_v31 = vpack.c.bf16 %v3875_v32, %v3871_v29  ;;  %v3940_v34 = vsub.f32 %v8379_v38, %v9087_v44  ;;  %v9093_v29 = vand.u32 4294901760, %v8401_v16 }
 0x514   :  { %6927 = vmatprep.subr.bf16.mxu0 %v6926_v58  ;;  %3549 = vmatprep.mubr.f32.mxu0 %v9100_v15  ;;  %v3952_v37 = vsub.f32 %v8381_v17, %v9086_v19  ;;  %v3946_v58 = vsub.f32 %v8383_v56, %v9085_v39  ;;  %v3958_v46 = vsub.f32 %v8385_v7, %v9088_v20  ;;  %v9094_v32 = vand.u32 4294901760, %v8410_v27 }
 0x515   :  { %6967 = vmatprep.subr.bf16.mxu1 %v8439_v30  ;;  %9149 = vst [vmem:[#allocation9_spill] sm:$0xff] %v8455_v31  ;;  %v3941_v33 = vand.u32 4294901760, %v3940_v34  ;;  %v3976_v20 = vsub.f32 %v8399_v54, %v9095_v47  ;;  %v3970_v34 = vsub.f32 %v8401_v16, %v9093_v29  ;;  %v9098_v43 = vand.u32 4294901760, %v8421_v52 }
 0x516   :  { %v3953_v39 = vand.u32 4294901760, %v3952_v37  ;;  %v3947_v19 = vand.u32 4294901760, %v3946_v58  ;;  %v3959_v44 = vand.u32 4294901760, %v3958_v46  ;;  %v9097_v42 = vand.u32 4294901760, %v8431_v35 }
 0x517   :  { %6929 = vmatpush1.bf16.msra.mxu0 %v6928_v25  ;;  %v3964_v25 = vsub.f32 %v8397_v53, %v9090_v3  ;;  %6969 = vmatpush1.bf16.msra.mxu1 %v8455_v31  ;;  %v3982_v3 = vsub.f32 %v8410_v27, %v9094_v32  ;;  %v3977_v46 = vand.u32 4294901760, %v3976_v20  ;;  %v3988_v32 = vsub.f32 %v8421_v52, %v9098_v43 }
 0x518   :  { %3491 = vmatprep.subr.mxu0 %v8346_v28  ;;  %v6970_v37 = vpack.c.bf16 %v3953_v39, %v3941_v33  ;;  %v8491_v58 = vpack.c.bf16 %v3959_v44, %v3947_v19  ;;  %v9096_v47 = vand.u32 4294901760, %v8435_v24  ;;  %v4000_v19 = vsub.f32 %v8431_v35, %v9097_v42 }
 0x519   :  { %v3965_v50 = vand.u32 4294901760, %v3964_v25  ;;  %v3971_v25 = vand.u32 4294901760, %v3970_v34  ;;  %v3983_v29 = vand.u32 4294901760, %v3982_v3  ;;  %v9099_v39 = vand.u32 4294901760, %v8437_v12 }
 0x51a   :  { %6971 = vmatprep.subr.bf16.mxu1 %v6970_v37  ;;  %v3989_v20 = vand.u32 4294901760, %v3988_v32  ;;  %v3994_v3 = vsub.f32 %v8435_v24, %v9096_v47  ;;  %v4001_v33 = vand.u32 4294901760, %v4000_v19  ;;  %v4023_v37 = vand.u32 4294901760, %v8444_v18 }
 0x51b   :  { %3494 = vmatpush1.msra.mxu0 %v8337_v60  ;;  %v8501_v44 = vpack.c.bf16 %v3977_v46, %v3965_v50  ;;  %v4011_v50 = vand.u32 4294901760, %v8441_v0  ;;  %v4006_v34 = vsub.f32 %v8437_v12, %v9099_v39  ;;  %v4017_v46 = vand.u32 4294901760, %v8446_v55 }
 0x51c   :  { %6931 = vmatprep.subr.bf16.mxu0 %v8191_v61  ;;  %3552 = vmatmul.mubr.f32.vlgmr.msra.gmra.mrb[6].mxu0 %v7496_v49  ;;  %v8508_v49 = vpack.c.bf16 %v3983_v29, %v3971_v25  ;;  %v3995_v29 = vand.u32 4294901760, %v3994_v3  ;;  %v4029_v25 = vand.u32 4294901760, %v8457_v11  ;;  %v8523_v47 = vpack.c.bf16 %v4001_v33, %v3989_v20 }
 0x51d   :  { %6933 = vmatpush1.bf16.msra.mxu0 %v8199_v4  ;;  %3632 = vmatprep.mubr.f32.mxu0 %v9100_v15  ;;  %v4012_v32 = vsub.f32 %v8441_v0, %v4011_v50  ;;  %v4007_v42 = vand.u32 4294901760, %v4006_v34  ;;  %v4024_v19 = vsub.f32 %v8444_v18, %v4023_v37  ;;  %v4018_v43 = vsub.f32 %v8446_v55, %v4017_v46 }
 0x51e   :  { %6935 = vmatprep.subr.bf16.mxu0 %v8203_v6  ;;  %v6938_v3 = vpack.c.bf16 %v3357_v13, %v3345_v22  ;;  %v4030_v15 = vsub.f32 %v8457_v11, %v4029_v25  ;;  %v9150_v20 = vand.u32 4294901760, %v8197_v36  ;;  %v9151_v33 = vand.u32 4294901760, %v8201_v5 }
 0x51f   :  { %v4013_v39 = vand.u32 4294901760, %v4012_v32  ;;  %v8533_v31 = vpack.c.bf16 %v4007_v42, %v3995_v29  ;;  %v4025_v30 = vand.u32 4294901760, %v4024_v19  ;;  %v4019_v45 = vand.u32 4294901760, %v4018_v43 }
 0x520   :  { %v6940_v34 = vpack.c.bf16 %v9151_v33, %v9150_v20  ;;  %v4031_v40 = vand.u32 4294901760, %v4030_v15  ;;  %v9152_v2 = vand.u32 4294901760, %v8205_v9  ;;  %v9153_v22 = vand.u32 4294901760, %v8208_v48 }
 0x521   :  { %6937 = vmatpush1.bf16.msra.mxu0 %v8212_v63  ;;  %v8540_v62 = vpack.c.bf16 %v4025_v30, %v4013_v39  ;;  %v9154_v5 = vand.u32 4294901760, %v8214_v8  ;;  %v9155_v13 = vand.u32 4294901760, %v8216_v14  ;;  %v9156_v42 = vmov 0.0  }
 0x522   :  { %3575 = vmatprep.subr.mxu0 %v8301_v59  ;;  %v8543_v23 = vpack.c.bf16 %v4031_v40, %v4019_v45  ;;  %v6942_v36 = vpack.c.bf16 %v9153_v22, %v9152_v2  ;;  %v9157_v48 = vand.u32 4294901760, %v8346_v28  ;;  %v9158_v14 = vand.u32 4294901760, %v8337_v60  ;;  %v4514_v45 = vld [vmem:[%s9076_s5 + $0xa0] sm:$0xff] }
 0x523   :  { %v6944_v15 = vpack.c.bf16 %v9155_v13, %v9154_v5  ;;  %v9162_v39 = vand.u32 4294901760, %v8385_v7  ;;  %v9168_v20 = vand.u32 4294901760, %v8431_v35  ;;  %v9170_v2 = vand.u32 4294901760, %v8437_v12 }
 0x524   :  { %v8621_v5 = vpack.c.bf16 %v4029_v25, %v4017_v46 }
 0x525   :  { %3577 = vmatpush1.msra.mxu0 %v8307_v51 }
 0x526   :  { %6939 = vmatprep.subr.bf16.mxu0 %v6938_v3  ;;  %3636 = vmatmul.mubr.f32.vlgmr.msra.gmra.mrb[6].mxu0 %v7519_v57  ;;  %v9167_v3 = vand.u32 4294901760, %v8421_v52 }
 0x527   :  { %6941 = vmatpush1.bf16.msra.mxu0 %v6940_v34  ;;  %3736 = vmatprep.mubr.f32.mxu0 %v9156_v42  ;;  %v9169_v34 = vand.u32 4294901760, %v8435_v24 }
 0x528   :  { %6943 = vmatprep.subr.bf16.mxu0 %v6942_v36  ;;  %v8611_v33 = vpack.c.bf16 %v9168_v20, %v9167_v3  ;;  %v8619_v36 = vpack.c.bf16 %v4023_v37, %v4011_v50  ;;  %v4494_v50 = vld [vmem:[%s9076_s5] sm:$0xff]  ;;  %v4496_v3 = vld [vmem:[%s9076_s5 + $0x10] sm:$0xff]  ;;  %v4497_v20 = vld [vmem:[%s9076_s5 + $0x18] sm:$0xff] }
 0x529   :  { %v8617_v22 = vpack.c.bf16 %v9170_v2, %v9169_v34  ;;  %v4540_v60 = vand.u32 4294901760, %v4496_v3 }
 0x52b   :  { %6945 = vmatpush1.bf16.msra.mxu0 %v6944_v15  ;;  %v8681_v8 = vsub.f32 %v4496_v3, %v4540_v60 }
 0x52c   :  { %3677 = vmatprep.subr.mxu0 %v9157_v48 }
 0x52d   :  { %9176 = vst [vmem:[#allocation15_spill] sm:$0xff] %v8681_v8 }
 0x52f   :  { %3681 = vmatpush1.msra.mxu0 %v9158_v14 }
 0x530   :  { %6947 = vmatprep.subr.bf16.mxu0 %v8191_v61  ;;  %3738 = vmatmul.mubr.f32.vlgmr.msra.gmra.mrb[6].mxu0 %v7485_v41  ;;  %v9159_v61 = vand.u32 4294901760, %v8379_v38 }
 0x531   :  { %6949 = vmatpush1.bf16.msra.mxu0 %v8199_v4  ;;  %3818 = vmatprep.mubr.f32.mxu0 %v9156_v42  ;;  %v9160_v4 = vand.u32 4294901760, %v8381_v17 }
 0x532   :  { %6951 = vmatprep.subr.bf16.mxu0 %v8203_v6  ;;  %v9161_v6 = vand.u32 4294901760, %v8383_v56 }
 0x533   :  { %v8587_v40 = vpack.c.bf16 %v9160_v4, %v9159_v61  ;;  %v4510_v61 = vld [vmem:[%s9076_s5 + $0x80] sm:$0xff]  ;;  %v4511_v4 = vld [vmem:[%s9076_s5 + $0x88] sm:$0xff] }
 0x534   :  { %v8593_v29 = vpack.c.bf16 %v9162_v39, %v9161_v6  ;;  %v4582_v46 = vand.u32 4294901760, %v4510_v61  ;;  %v4585_v25 = vand.u32 4294901760, %v4511_v4  ;;  %v4534_v6 = vand.u32 4294901760, %v4494_v50  ;;  %v4512_v39 = vld [vmem:[%s9076_s5 + $0x90] sm:$0xff] }
 0x535   :  { %6953 = vmatpush1.bf16.msra.mxu0 %v8212_v63  ;;  %v9163_v63 = vand.u32 4294901760, %v8397_v53 }
 0x536   :  { %3761 = vmatprep.subr.mxu0 %v8301_v59  ;;  %v9164_v59 = vand.u32 4294901760, %v8399_v54  ;;  %v8651_v34 = vsub.f32 %v4510_v61, %v4582_v46  ;;  %v8653_v2 = vsub.f32 %v4511_v4, %v4585_v25  ;;  %v4515_v61 = vld [vmem:[%s9076_s5 + $0xa8] sm:$0xff]  ;;  %v8672_v30 = vpack.c.bf16 %v4585_v25, %v4582_v46 }
 0x537   :  { %v4594_v46 = vand.u32 4294901760, %v4514_v45  ;;  %v4597_v25 = vand.u32 4294901760, %v4515_v61 }
 0x538   :  { %v8599_v32 = vpack.c.bf16 %v9164_v59, %v9163_v63  ;;  %9175 = vst [vmem:[#allocation14_spill] sm:$0xff] %v8672_v30 }
 0x539   :  { %3763 = vmatpush1.msra.mxu0 %v8307_v51  ;;  %v9166_v51 = vand.u32 4294901760, %v8410_v27 }
 0x53a   :  { %3820 = vmatmul.mubr.f32.vlgmr.msra.gmra.mrb[6].mxu0 %v7485_v41  ;;  %v9165_v41 = vand.u32 4294901760, %v8401_v16  ;;  %7051 = vmatprep.subr.bf16.mxu0 %v8672_v30  ;;  %v4501_v30 = vld [vmem:[%s9076_s5 + $0x38] sm:$0xff] }
 0x53c   :  { %v8605_v19 = vpack.c.bf16 %v9166_v51, %v9165_v41  ;;  %v4513_v41 = vld [vmem:[%s9076_s5 + $0x98] sm:$0xff]  ;;  %v4588_v51 = vand.u32 4294901760, %v4512_v39 }
 0x53e   :  { %v8662_v28 = vsub.f32 %v4512_v39, %v4588_v51 }
 0x540   :  { %9173 = vst [vmem:[#allocation12_spill] sm:$0xff] %v8662_v28 }
 0x5da   :  { %v3241_v13 = vpop.f32.mrb[6].mxu1 }
 0x5db   :  { %7327 = vrcp.f32 %v3241_v13  ;;  %v6545_v15 = vpop.f32.mrb[7].mxu1  ;;  %v8655_v13 = vsub.f32 %v4494_v50, %v4534_v6  ;;  %v4543_v50 = vand.u32 4294901760, %v4497_v20 }
 0x5dc   :  { %v4591_v15 = vand.u32 4294901760, %v4513_v41 }
 0x5dd   :  { %9171 = vst [vmem:[#allocation10_spill] sm:$0xff] %v8655_v13  ;;  %v8685_v57 = vsub.f32 %v4497_v20, %v4543_v50  ;;  %v4500_v20 = vld [vmem:[%s9076_s5 + $0x30] sm:$0xff] }
 0x5de   :  { %v8670_v4 = vsub.f32 %v4513_v41, %v4591_v15  ;;  %v4516_v41 = vld [vmem:[%s9076_s5 + $0xb0] sm:$0xff] }
 0x5df   :  { %9178 = vst [vmem:[#allocation17_spill] sm:$0xff] %v8685_v57  ;;  %v8706_v57 = vsub.f32 %v4514_v45, %v4594_v46  ;;  %v4519_v45 = vld [vmem:[%s9076_s5 + $0xc8] sm:$0xff] }
 0x5e0   :  { %9174 = vst [vmem:[#allocation13_spill] sm:$0xff] %v8670_v4  ;;  %v4609_v13 = vand.u32 4294901760, %v4519_v45 }
 0x5e1   :  { %9180 = vst [vmem:[#allocation19_spill] sm:$0xff] %v8706_v57 }
 0x5e5   :  { %v7328_v48 = vpop.eup %7327 }
 0x5e6   :  { %v3246_v14 = vmul.f32 %v7328_v48, %v8221_v21  ;;  %v4495_v21 = vld [vmem:[%s9076_s5 + $0x8] sm:$0xff] }
 0x5e7   :  { %v4537_v59 = vand.u32 4294901760, %v4495_v21 }
 0x5e8   :  { %v3843_v37 = vsel %vm1051_vm2, %v3246_v14, 0 }
 0x5e9   :  { %v8640_v63 = vand.u32 4294901760, %v3843_v37  ;;  %v8660_v14 = vsub.f32 %v4495_v21, %v4537_v59  ;;  %v4499_v21 = vld [vmem:[%s9076_s5 + $0x28] sm:$0xff]  ;;  %v8683_v9 = vpack.c.bf16 %v4537_v59, %v4534_v6  ;;  %v8695_v6 = vpack.c.bf16 %v4591_v15, %v4588_v51  ;;  %v4517_v59 = vld [vmem:[%s9076_s5 + $0xb8] sm:$0xff]  ;;  %v4518_v51 = vld [vmem:[%s9076_s5 + $0xc0] sm:$0xff] }
 0x5ea   :  { %v4549_v8 = vand.u32 4294901760, %v4499_v21 }
 0x5eb   :  { %v8658_v48 = vsub.f32 %v3843_v37, %v8640_v63  ;;  %9172 = vst [vmem:[#allocation11_spill] sm:$0xff] %v8660_v14  ;;  %v4498_v37 = vld [vmem:[%s9076_s5 + $0x20] sm:$0xff]  ;;  %9177 = vst [vmem:[#allocation16_spill] sm:$0xff] %v8683_v9  ;;  %7053 = vmatpush3.bf16.msra.mxu0 %v8683_v9  ;;  %v8710_v9 = vpack.c.bf16 %v4543_v50, %v4540_v60  ;;  %v4600_v14 = vand.u32 4294901760, %v4516_v41  ;;  %v4555_v60 = vand.u32 4294901760, %v4501_v30 }
 0x5ec   :  { %v4546_v3 = vand.u32 4294901760, %v4498_v37  ;;  %9179 = vst [vmem:[#allocation18_spill] sm:$0xff] %v8695_v6  ;;  %v8717_v28 = vsub.f32 %v4499_v21, %v4549_v8  ;;  %7055 = vmatprep.subr.bf16.mxu0 %v8695_v6  ;;  %v4502_v50 = vld [vmem:[%s9076_s5 + $0x40] sm:$0xff]  ;;  %v8732_v21 = vpack.c.bf16 %v4597_v25, %v4594_v46  ;;  %v4606_v6 = vand.u32 4294901760, %v4518_v51 }
 0x5ed   :  { %v9116_v39 = vand.u32 4294901760, %v8658_v48  ;;  %9182 = vst [vmem:[#allocation21_spill] sm:$0xff] %v8710_v9  ;;  %v8740_v57 = vsub.f32 %v4501_v30, %v4555_v60 }
 0x5ee   :  { %v8715_v4 = vsub.f32 %v4498_v37, %v4546_v3  ;;  %9184 = vst [vmem:[#allocation23_spill] sm:$0xff] %v8717_v28  ;;  %v8730_v37 = vsub.f32 %v4516_v41, %v4600_v14  ;;  %v8744_v41 = vpack.c.bf16 %v4549_v8, %v4546_v3  ;;  %v8746_v46 = vsub.f32 %v4518_v51, %v4606_v6 }
 0x5ef   :  { %v3929_v43 = vsub.f32 %v8658_v48, %v9116_v39  ;;  %v8708_v39 = vsub.f32 %v4515_v61, %v4597_v25  ;;  %v4603_v61 = vand.u32 4294901760, %v4517_v59  ;;  %7057 = vmatpush3.bf16.msra.mxu0 %v8710_v9  ;;  %v4558_v25 = vand.u32 4294901760, %v4502_v50 }
 0x5f0   :  { %9183 = vst [vmem:[#allocation22_spill] sm:$0xff] %v8715_v4  ;;  %7059 = vmatprep.subr.bf16.mxu0 %v8732_v21 }
 0x5f1   :  { %9181 = vst [vmem:[#allocation20_spill] sm:$0xff] %v8708_v39  ;;  %v3930_v15 = vand.u32 4294901760, %v3929_v43  ;;  %v4552_v39 = vand.u32 4294901760, %v4500_v20  ;;  %v4503_v43 = vld [vmem:[%s9076_s5 + $0x48] sm:$0xff]  ;;  %v8736_v28 = vsub.f32 %v4517_v59, %v4603_v61  ;;  %v8750_v9 = vpack.c.bf16 %v4603_v61, %v4600_v14  ;;  %v4505_v14 = vld [vmem:[%s9076_s5 + $0x58] sm:$0xff] }
 0x5f2   :  { %v8753_v59 = vsub.f32 %v4502_v50, %v4558_v25 }
 0x5f3   :  { %3931 = vmatmul.mubr.f32.vlgmr.msra.gmra.mrb[8].mxu1 %v3930_v15  ;;  %v8738_v4 = vsub.f32 %v4500_v20, %v4552_v39  ;;  %v4561_v15 = vand.u32 4294901760, %v4503_v43  ;;  %7061 = vmatpush3.bf16.msra.mxu0 %v8744_v41  ;;  %v8757_v20 = vpack.c.bf16 %v4555_v60, %v4552_v39 }
 0x5f4   :  { %6973 = vmatpush1.bf16.msra.mxu1 %v8491_v58  ;;  %4081 = vmatprep.mubr.f32.mxu1 %v9156_v42  ;;  %v8748_v58 = vsub.f32 %v4519_v45, %v4609_v13 }
 0x5f5   :  { %6975 = vmatprep.subr.bf16.mxu1 %v8501_v44  ;;  %v8755_v30 = vsub.f32 %v4503_v43, %v4561_v15  ;;  %7063 = vmatprep.subr.bf16.mxu0 %v8750_v9  ;;  %v8762_v44 = vpack.c.bf16 %v4609_v13, %v4606_v6  ;;  %v8765_v8 = vpack.c.bf16 %v4561_v15, %v4558_v25  ;;  %v4567_v6 = vand.u32 4294901760, %v4505_v14 }
 0x5f6   :  { %v7128_v39 = vpack.c.bf16 %v8740_v57, %v8738_v4  ;;  %v7130_v51 = vpack.c.bf16 %v8748_v58, %v8746_v46 }
 0x5f7   :  { %7065 = vmatpush3.bf16.msra.mxu0 %v8757_v20  ;;  %9185 = vst [vmem:[#allocation24_spill] sm:$0xff] %v8765_v8  ;;  %v7132_v60 = vpack.c.bf16 %v8755_v30, %v8753_v59  ;;  %v8868_v43 = vsub.f32 %v4505_v14, %v4567_v6 }
 0x5f8   :  { %6977 = vmatpush1.bf16.msra.mxu1 %v8508_v49  ;;  %7067 = vmatprep.subr.bf16.mxu0 %v8762_v44  ;;  %v9186_v49 = vpack.c.bf16 %v8381_v17, %v8379_v38  ;;  %v9190_v38 = vpack.c.bf16 %v8431_v35, %v8421_v52  ;;  %v9191_v17 = vpack.c.bf16 %v8437_v12, %v8435_v24  ;;  %v9194_v12 = vld [vmem:[#allocation5_spill] sm:$0xff]  ;;  %v9195_v35 = vld [vmem:[#allocation6_spill] sm:$0xff]  ;;  %v9201_v52 = vld [vmem:[#allocation11_spill] sm:$0xff] }
 0x5f9   :  { %6979 = vmatprep.subr.bf16.mxu1 %v8523_v47  ;;  %v9187_v47 = vpack.c.bf16 %v8385_v7, %v8383_v56  ;;  %v9192_v56 = vpack.c.bf16 %v8444_v18, %v8441_v0  ;;  %v9193_v7 = vpack.c.bf16 %v8457_v11, %v8446_v55  ;;  %v9196_v0 = vld [vmem:[#allocation7_spill] sm:$0xff]  ;;  %v9202_v24 = vld [vmem:[#allocation12_spill] sm:$0xff]  ;;  %v9203_v18 = vld [vmem:[#allocation13_spill] sm:$0xff] }
 0x5fa   :  { %v9204_v55 = vld [vmem:[#allocation15_spill] sm:$0xff]  ;;  %v9205_v11 = vld [vmem:[#allocation17_spill] sm:$0xff] }
 0x5fb   :  { %7069 = vmatpush3.bf16.msra.mxu0 %v8765_v8 }
 0x5fc   :  { %6981 = vmatpush1.bf16.msra.mxu1 %v8533_v31  ;;  %v9188_v31 = vpack.c.bf16 %v8399_v54, %v8397_v53  ;;  %v9197_v53 = vld [vmem:[#allocation8_spill] sm:$0xff]  ;;  %v9198_v54 = vld [vmem:[#allocation9_spill] sm:$0xff] }
 0x5fd   :  { %6983 = vmatprep.subr.bf16.mxu1 %v8540_v62  ;;  %v9189_v62 = vpack.c.bf16 %v8410_v27, %v8401_v16  ;;  %v9199_v16 = vand.u32 4294901760, %v8658_v48  ;;  %v7114_v27 = vpack.c.bf16 %v8653_v2, %v8651_v34 }
 0x600   :  { %6985 = vmatpush1.bf16.msra.mxu1 %v8543_v23  ;;  %v7120_v23 = vpack.c.bf16 %v9205_v11, %v9204_v55 }
 0x601   :  { %6987 = vmatprep.subr.bf16.mxu1 %v9186_v49 }
 0x603   :  { %4083 = vmatmul.mubr.f32.vlgmr.msra.gmra.mrb[8].mxu1 %v8640_v63 }
 0x604   :  { %6989 = vmatpush1.bf16.msra.mxu1 %v9187_v47  ;;  %4185 = vmatprep.mubr.f32.mxu1 %v9156_v42 }
 0x605   :  { %6991 = vmatprep.subr.bf16.mxu1 %v9188_v31  ;;  %v4522_v31 = vld [vmem:[%s9076_s5 + $0xe0] sm:$0xff] }
 0x608   :  { %6993 = vmatpush1.bf16.msra.mxu1 %v9189_v62  ;;  %v4523_v62 = vld [vmem:[%s9076_s5 + $0xe8] sm:$0xff] }
 0x609   :  { %6995 = vmatprep.subr.bf16.mxu1 %v9190_v38  ;;  %v4618_v38 = vand.u32 4294901760, %v4522_v31 }
 0x60c   :  { %6997 = vmatpush1.bf16.msra.mxu1 %v9191_v17  ;;  %v4621_v17 = vand.u32 4294901760, %v4523_v62 }
 0x60d   :  { %6999 = vmatprep.subr.bf16.mxu1 %v9192_v56  ;;  %v8874_v49 = vpop.f32.mrb[6].mxu0  ;;  %v4506_v56 = vld [vmem:[%s9076_s5 + $0x60] sm:$0xff] }
 0x60e   :  { %v8876_v47 = vpop.f32.mrb[7].mxu0 }
 0x610   :  { %7001 = vmatpush1.bf16.msra.mxu1 %v9193_v7  ;;  %v4507_v7 = vld [vmem:[%s9076_s5 + $0x68] sm:$0xff] }
 0x611   :  { %7003 = vmatprep.subr.bf16.mxu1 %v8343_v1 }
 0x613   :  { %4188 = vmatmul.mubr.f32.vlgmr.msra.gmra.mrb[8].mxu1 %v8658_v48  ;;  %v4504_v48 = vld [vmem:[%s9076_s5 + $0x50] sm:$0xff] }
 0x614   :  { %7005 = vmatpush1.bf16.msra.mxu1 %v8356_v26  ;;  %4274 = vmatprep.mubr.f32.mxu1 %v9156_v42  ;;  %v4564_v3 = vand.u32 4294901760, %v4504_v48 }
 0x615   :  { %7007 = vmatprep.subr.bf16.mxu1 %v8372_v10 }
 0x616   :  { %v8866_v50 = vsub.f32 %v4504_v48, %v4564_v3 }
 0x618   :  { %7009 = vmatpush1.bf16.msra.mxu1 %v9194_v12  ;;  %v7136_v15 = vpack.c.bf16 %v8868_v43, %v8866_v50 }
 0x619   :  { %7011 = vmatprep.subr.bf16.mxu1 %v9195_v35 }
 0x61c   :  { %7013 = vmatpush1.bf16.msra.mxu1 %v9196_v0 }
 0x61d   :  { %7015 = vmatprep.subr.bf16.mxu1 %v9197_v53 }
 0x620   :  { %7017 = vmatpush1.bf16.msra.mxu1 %v9198_v54 }
 0x621   :  { %7019 = vmatprep.subr.bf16.mxu1 %v8587_v40  ;;  %v9207_v40 = vld [vmem:[#allocation20_spill] sm:$0xff] }
 0x623   :  { %4278 = vmatmul.mubr.f32.vlgmr.msra.gmra.mrb[8].mxu1 %v9199_v16 }
 0x624   :  { %7021 = vmatpush1.bf16.msra.mxu1 %v8593_v29  ;;  %4396 = vmatprep.mubr.f32.mxu1 %v9156_v42 }
 0x625   :  { %7023 = vmatprep.subr.bf16.mxu1 %v8599_v32  ;;  %v4520_v32 = vld [vmem:[%s9076_s5 + $0xd0] sm:$0xff] }
 0x628   :  { %7025 = vmatpush1.bf16.msra.mxu1 %v8605_v19  ;;  %v4521_v19 = vld [vmem:[%s9076_s5 + $0xd8] sm:$0xff] }
 0x629   :  { %7027 = vmatprep.subr.bf16.mxu1 %v8611_v33  ;;  %v9208_v33 = vld [vmem:[#allocation22_spill] sm:$0xff]  ;;  %v4615_v13 = vand.u32 4294901760, %v4521_v19 }
 0x62b   :  { %v8862_v61 = vsub.f32 %v4521_v19, %v4615_v13  ;;  %v4509_v19 = vld [vmem:[%s9076_s5 + $0x78] sm:$0xff] }
 0x62c   :  { %7029 = vmatpush1.bf16.msra.mxu1 %v8617_v22  ;;  %v9209_v22 = vld [vmem:[#allocation23_spill] sm:$0xff]  ;;  %v4579_v48 = vand.u32 4294901760, %v4509_v19 }
 0x62d   :  { %7031 = vmatprep.subr.bf16.mxu1 %v8619_v36  ;;  %v7124_v36 = vpack.c.bf16 %v9209_v22, %v9208_v33 }
 0x630   :  { %7033 = vmatpush1.bf16.msra.mxu1 %v8621_v5  ;;  %v7126_v5 = vpack.c.bf16 %v8736_v28, %v8730_v37 }
 0x631   :  { %7035 = vmatprep.subr.bf16.mxu1 %v8343_v1  ;;  %v9200_v1 = vld [vmem:[#allocation10_spill] sm:$0xff] }
 0x633   :  { %4398 = vmatmul.mubr.f32.vlgmr.msra.gmra.mrb[8].mxu1 %v8640_v63 }
 0x634   :  { %7037 = vmatpush1.bf16.msra.mxu1 %v8356_v26  ;;  %4484 = vmatprep.mubr.f32.mxu1 %v9156_v42  ;;  %v7116_v26 = vpack.c.bf16 %v9201_v52, %v9200_v1  ;;  %v9206_v42 = vld [vmem:[#allocation19_spill] sm:$0xff] }
 0x635   :  { %7039 = vmatprep.subr.bf16.mxu1 %v8372_v10  ;;  %v7118_v10 = vpack.c.bf16 %v9203_v18, %v9202_v24  ;;  %v7122_v29 = vpack.c.bf16 %v9207_v40, %v9206_v42 }
 0x638   :  { %7041 = vmatpush1.bf16.msra.mxu1 %v9194_v12  ;;  %v4570_v12 = vand.u32 4294901760, %v4506_v56 }
 0x639   :  { %7043 = vmatprep.subr.bf16.mxu1 %v9195_v35  ;;  %v4573_v35 = vand.u32 4294901760, %v4507_v7 }
 0x63b   :  { %v4738_v16 = vsub.f32 %v4507_v7, %v4573_v35  ;;  %v4760_v7 = vand.u32 4294901760, %v8651_v34 }
 0x63c   :  { %7045 = vmatpush1.bf16.msra.mxu1 %v9196_v0  ;;  %v4843_v0 = vsub.f32 %v4522_v31, %v4618_v38 }
 0x63d   :  { %7047 = vmatprep.subr.bf16.mxu1 %v9197_v53  ;;  %v4850_v53 = vsub.f32 %v4523_v62, %v4621_v17 }
 0x640   :  { %7049 = vmatpush1.bf16.msra.mxu1 %v9198_v54  ;;  %v4731_v54 = vsub.f32 %v4506_v56, %v4570_v12  ;;  %v8908_v56 = vpack.c.bf16 %v4621_v17, %v4618_v38 }
 0x641   :  { %7115 = vmatprep.subr.bf16.mxu1 %v7114_v27  ;;  %v4524_v27 = vld [vmem:[%s9076_s5 + $0xf0] sm:$0xff] }
 0x642   :  { %9212 = vst [vmem:[#allocation7_spill] sm:$0xff] %v8908_v56 }
 0x643   :  { %4486 = vmatmul.mubr.f32.vlgmr.msra.gmra.mrb[8].mxu1 %v8640_v63  ;;  %v4612_v63 = vand.u32 4294901760, %v4520_v32 }
 0x644   :  { %7117 = vmatpush3.bf16.msra.mxu1 %v7116_v26  ;;  %v4525_v26 = vld [vmem:[%s9076_s5 + $0xf8] sm:$0xff] }
 0x645   :  { %7119 = vmatprep.subr.bf16.mxu1 %v7118_v10  ;;  %v8860_v45 = vsub.f32 %v4520_v32, %v4612_v63  ;;  %v7138_v10 = vpack.c.bf16 %v4850_v53, %v4843_v0  ;;  %v4508_v32 = vld [vmem:[%s9076_s5 + $0x70] sm:$0xff]  ;;  %v8902_v14 = vpack.c.bf16 %v4615_v13, %v4612_v63  ;;  %v4767_v63 = vand.u32 4294901760, %v8653_v2 }
 0x646   :  { %v8912_v13 = vpack.c.bf16 %v4573_v35, %v4570_v12 }
 0x647   :  { %v7134_v25 = vpack.c.bf16 %v8862_v61, %v8860_v45  ;;  %9210 = vst [vmem:[#allocation5_spill] sm:$0xff] %v8902_v14  ;;  %7071 = vmatprep.subr.bf16.mxu0 %v8902_v14  ;;  %v4768_v38 = vsub.f32 %v8653_v2, %v4767_v63 }
 0x648   :  { %7121 = vmatpush3.bf16.msra.mxu1 %v7120_v23  ;;  %v4624_v23 = vand.u32 4294901760, %v4524_v27  ;;  %9213 = vst [vmem:[#allocation8_spill] sm:$0xff] %v8912_v13 }
 0x649   :  { %7123 = vmatprep.subr.bf16.mxu1 %v7122_v29  ;;  %v4627_v29 = vand.u32 4294901760, %v4525_v26  ;;  %v4769_v12 = vand.u32 4294901760, %v4768_v38 }
 0x64c   :  { %7125 = vmatpush3.bf16.msra.mxu1 %v7124_v36  ;;  %v7140_v36 = vpack.c.bf16 %v4738_v16, %v4731_v54 }
 0x64d   :  { %7127 = vmatprep.subr.bf16.mxu1 %v7126_v5  ;;  %v4576_v5 = vand.u32 4294901760, %v4508_v32 }
 0x650   :  { %7129 = vmatpush3.bf16.msra.mxu1 %v7128_v39  ;;  %v4857_v39 = vsub.f32 %v4524_v27, %v4624_v23  ;;  %v4761_v27 = vsub.f32 %v8651_v34, %v4760_v7 }
 0x651   :  { %7131 = vmatprep.subr.bf16.mxu1 %v7130_v51  ;;  %v4864_v51 = vsub.f32 %v4525_v26, %v4627_v29  ;;  %v8919_v26 = vpack.c.bf16 %v4579_v48, %v4576_v5 }
 0x652   :  { %v4762_v17 = vand.u32 4294901760, %v4761_v27  ;;  %v4858_v34 = vand.u32 4294901760, %v4857_v39 }
 0x653   :  { %v7142_v31 = vpack.c.bf16 %v4864_v51, %v4857_v39  ;;  %9215 = vst [vmem:[#allocation10_spill] sm:$0xff] %v8919_v26 }
 0x654   :  { %7133 = vmatpush3.bf16.msra.mxu1 %v7132_v60  ;;  %v8904_v60 = vpack.c.bf16 %v4567_v6, %v4564_v3  ;;  %v7178_v3 = vpack.c.bf16 %v4767_v63, %v4760_v7  ;;  %v8916_v6 = vpack.c.bf16 %v4627_v29, %v4624_v23  ;;  %v7082_v35 = vpack.c.bf16 %v4769_v12, %v4762_v17 }
 0x655   :  { %7135 = vmatprep.subr.bf16.mxu1 %v7134_v25  ;;  %v4745_v25 = vsub.f32 %v4508_v32, %v4576_v5  ;;  %v4851_v32 = vand.u32 4294901760, %v4850_v53  ;;  %v4865_v5 = vand.u32 4294901760, %v4864_v51 }
 0x656   :  { %9211 = vst [vmem:[#allocation6_spill] sm:$0xff] %v8904_v60  ;;  %7073 = vmatpush3.bf16.msra.mxu0 %v8904_v60  ;;  %9214 = vst [vmem:[#allocation9_spill] sm:$0xff] %v8916_v6 }
 0x657   :  { %7075 = vmatprep.subr.bf16.mxu0 %v8908_v56  ;;  %v4852_v7 = vsub.f32 %v4850_v53, %v4851_v32 }
 0x658   :  { %7137 = vmatpush3.bf16.msra.mxu1 %v7136_v15  ;;  %v4752_v15 = vsub.f32 %v4509_v19, %v4579_v48  ;;  %v4732_v19 = vand.u32 4294901760, %v4731_v54  ;;  %v4746_v48 = vand.u32 4294901760, %v4745_v25 }
 0x659   :  { %7139 = vmatprep.subr.bf16.mxu1 %v7138_v10  ;;  %v4844_v10 = vand.u32 4294901760, %v4843_v0  ;;  %v4853_v17 = vand.u32 4294901760, %v4852_v7 }
 0x65a   :  { %v7144_v62 = vpack.c.bf16 %v4752_v15, %v4745_v25  ;;  %7077 = vmatpush3.bf16.msra.mxu0 %v8912_v13  ;;  %v4753_v2 = vand.u32 4294901760, %v4752_v15  ;;  %v4733_v63 = vsub.f32 %v4731_v54, %v4732_v19  ;;  %v4747_v13 = vsub.f32 %v4745_v25, %v4746_v48 }
 0x65b   :  { %7079 = vmatprep.subr.bf16.mxu0 %v8916_v6  ;;  %v8924_v23 = vpack.c.bf16 %v4851_v32, %v4844_v10 }
 0x65c   :  { %7141 = vmatpush3.bf16.msra.mxu1 %v7140_v36  ;;  %v4739_v36 = vand.u32 4294901760, %v4738_v16  ;;  %v4734_v12 = vand.u32 4294901760, %v4733_v63  ;;  %v4754_v56 = vsub.f32 %v4752_v15, %v4753_v2 }
 0x65d   :  { %7143 = vmatprep.subr.bf16.mxu1 %v7142_v31  ;;  %v4845_v31 = vsub.f32 %v4843_v0, %v4844_v10  ;;  %v4748_v10 = vand.u32 4294901760, %v4747_v13  ;;  %v4669_v13 = vand.u32 4294901760, %v9205_v11 }
 0x65e   :  { %7081 = vmatpush3.bf16.msra.mxu0 %v8919_v26  ;;  %v8926_v29 = vpack.c.bf16 %v4739_v36, %v4732_v19  ;;  %v4740_v38 = vsub.f32 %v4738_v16, %v4739_v36  ;;  %v4866_v26 = vsub.f32 %v4864_v51, %v4865_v5  ;;  %v4755_v53 = vand.u32 4294901760, %v4754_v56 }
 0x65f   :  { %7083 = vmatprep.subr.bf16.mxu0 %v7082_v35  ;;  %v4846_v27 = vand.u32 4294901760, %v4845_v31  ;;  %v4859_v35 = vsub.f32 %v4857_v39, %v4858_v34  ;;  %v4648_v16 = vand.u32 4294901760, %v9200_v1  ;;  %v4655_v39 = vand.u32 4294901760, %v9201_v52 }
 0x660   :  { %7145 = vmatpush3.bf16.msra.mxu1 %v7144_v62  ;;  %v8928_v62 = vpack.c.bf16 %v4865_v5, %v4858_v34  ;;  %v4741_v6 = vand.u32 4294901760, %v4740_v38  ;;  %v4867_v8 = vand.u32 4294901760, %v4866_v26  ;;  %v8938_v32 = vpack.c.bf16 %v4755_v53, %v4748_v10 }
 0x661   :  { %7179 = vmatprep.subr.bf16.mxu1 %v7178_v3  ;;  %v8930_v3 = vpack.c.bf16 %v4753_v2, %v4746_v48  ;;  %v8932_v60 = vpack.c.bf16 %v4853_v17, %v4846_v27  ;;  %v4860_v14 = vand.u32 4294901760, %v4859_v35  ;;  %v4649_v51 = vsub.f32 %v9200_v1, %v4648_v16 }
 0x662   :  { %v8934_v0 = vpack.c.bf16 %v4741_v6, %v4734_v12  ;;  %v4656_v25 = vsub.f32 %v9201_v52, %v4655_v39  ;;  %v4774_v6 = vand.u32 4294901760, %v9202_v24  ;;  %v4788_v52 = vand.u32 4294901760, %v9206_v42 }
 0x663   :  { %v8936_v54 = vpack.c.bf16 %v4867_v8, %v4860_v14  ;;  %v4781_v8 = vand.u32 4294901760, %v9203_v18  ;;  %v4662_v14 = vand.u32 4294901760, %v9204_v55  ;;  %v4650_v34 = vand.u32 4294901760, %v4649_v51 }
 0x664   :  { %v4657_v1 = vand.u32 4294901760, %v4656_v25  ;;  %v4775_v48 = vsub.f32 %v9202_v24, %v4774_v6  ;;  %v7180_v2 = vpack.c.bf16 %v4655_v39, %v4648_v16  ;;  %v4676_v12 = vand.u32 4294901760, %v9208_v33 }
 0x665   :  { %v4782_v31 = vsub.f32 %v9203_v18, %v4781_v8  ;;  %v7182_v63 = vpack.c.bf16 %v4781_v8, %v4774_v6  ;;  %v7184_v27 = vpack.c.bf16 %v4669_v13, %v4662_v14  ;;  %v4663_v38 = vsub.f32 %v9204_v55, %v4662_v14 }
 0x666   :  { %v4683_v35 = vand.u32 4294901760, %v9209_v22  ;;  %v4670_v24 = vsub.f32 %v9205_v11, %v4669_v13  ;;  %v7084_v18 = vpack.c.bf16 %v4657_v1, %v4650_v34  ;;  %v4776_v16 = vand.u32 4294901760, %v4775_v48 }
 0x667   :  { %v4783_v55 = vand.u32 4294901760, %v4782_v31  ;;  %v4789_v51 = vsub.f32 %v9206_v42, %v4788_v52  ;;  %v4697_v42 = vand.u32 4294901760, %v8740_v57 }
 0x668   :  { %v4671_v6 = vand.u32 4294901760, %v4670_v24  ;;  %v4684_v14 = vsub.f32 %v9209_v22, %v4683_v35 }
 0x66a   :  { %v4685_v24 = vand.u32 4294901760, %v4684_v14  ;;  %v4725_v14 = vand.u32 4294901760, %v8868_v43 }
 0x716   :  { %v4487_v15 = vpop.f32.mrb[8].mxu1 }
 0x717   :  { %v4492_v19 = vmul.f32 %v4487_v15, %v8874_v49  ;;  %v4489_v26 = vpop.f32.mrb[9].mxu1  ;;  %v4795_v49 = vand.u32 4294901760, %v9207_v40  ;;  %v4664_v15 = vand.u32 4294901760, %v4663_v38  ;;  %v4823_v38 = vand.u32 4294901760, %v8748_v58 }
 0x718   :  { %v4493_v56 = vmul.f32 %v4489_v26, %v8876_v47  ;;  %v4809_v26 = vand.u32 4294901760, %v8736_v28 }
 0x719   :  { %v8950_v36 = vand.u32 4294901760, %v4492_v19  ;;  %v7186_v53 = vpack.c.bf16 %v4795_v49, %v4788_v52  ;;  %v4796_v25 = vsub.f32 %v9207_v40, %v4795_v49  ;;  %v4677_v40 = vsub.f32 %v9208_v33, %v4676_v12 }
 0x71a   :  { %v8952_v5 = vand.u32 4294901760, %v4493_v56  ;;  %v4810_v34 = vsub.f32 %v8736_v28, %v4809_v26  ;;  %v7086_v52 = vpack.c.bf16 %v4783_v55, %v4776_v16  ;;  %v4790_v49 = vand.u32 4294901760, %v4789_v51 }
 0x71b   :  { %v8958_v47 = vsub.f32 %v4492_v19, %v8950_v36  ;;  %v4802_v19 = vand.u32 4294901760, %v8730_v37  ;;  %v4797_v48 = vand.u32 4294901760, %v4796_v25  ;;  %v7088_v33 = vpack.c.bf16 %v4671_v6, %v4664_v15 }
 0x71c   :  { %v8962_v7 = vsub.f32 %v4493_v56, %v8952_v5  ;;  %v4690_v56 = vand.u32 4294901760, %v8738_v4  ;;  %v4678_v28 = vand.u32 4294901760, %v4677_v40  ;;  %v4811_v16 = vand.u32 4294901760, %v4810_v34 }
 0x71d   :  { %v4637_v17 = vand.u32 4294901760, %v8958_v47  ;;  %v4803_v13 = vsub.f32 %v8730_v37, %v4802_v19  ;;  %v7190_v31 = vpack.c.bf16 %v4809_v26, %v4802_v19  ;;  %v4698_v37 = vsub.f32 %v8740_v57, %v4697_v42 }
 0x71e   :  { %5007 = vmatprep.mubr.f32.mxu1 %v8962_v7  ;;  %v4631_v10 = vand.u32 4294901760, %v8962_v7  ;;  %v4691_v22 = vsub.f32 %v8738_v4, %v4690_v56  ;;  %v4704_v4 = vand.u32 4294901760, %v8753_v59  ;;  %v4711_v57 = vand.u32 4294901760, %v8755_v30 }
 0x71f   :  { %v4638_v39 = vsub.f32 %v8958_v47, %v4637_v17  ;;  %5010 = vmatmul.mubr.f32.vlgmr.msra.gmra.mrb[10].mxu1 %v8958_v47  ;;  %v4699_v51 = vand.u32 4294901760, %v4698_v37  ;;  %v4830_v25 = vand.u32 4294901760, %v8860_v45  ;;  %v7092_v15 = vpack.c.bf16 %v4685_v24, %v4678_v28 }
 0x720   :  { %7181 = vmatpush3.bf16.msra.mxu1 %v7180_v2  ;;  %5284 = vmatprep.mubr.f32.mxu1 %v8952_v5  ;;  %v4632_v11 = vsub.f32 %v8962_v7, %v4631_v10  ;;  %v7188_v2 = vpack.c.bf16 %v4683_v35, %v4676_v12  ;;  %v7090_v12 = vpack.c.bf16 %v4797_v48, %v4790_v49  ;;  %v9225_v7 = vld [vmem:[#allocation9_spill] sm:$0xff] }
 0x721   :  { %7183 = vmatprep.subr.bf16.mxu1 %v7182_v63  ;;  %v4639_v1 = vand.u32 4294901760, %v4638_v39  ;;  %v4816_v63 = vand.u32 4294901760, %v8746_v46  ;;  %v4824_v39 = vsub.f32 %v8748_v58, %v4823_v38  ;;  %v4712_v58 = vsub.f32 %v8755_v30, %v4711_v57 }
 0x722   :  { %v4633_v8 = vand.u32 4294901760, %v4632_v11  ;;  %v4837_v11 = vand.u32 4294901760, %v8862_v61  ;;  %v7196_v40 = vpack.c.bf16 %v4711_v57, %v4704_v4 }
 0x723   :  { %v4817_v35 = vsub.f32 %v8746_v46, %v4816_v63  ;;  %v7194_v55 = vpack.c.bf16 %v4823_v38, %v4816_v63  ;;  %v4705_v46 = vsub.f32 %v8753_v59, %v4704_v4  ;;  %v4825_v6 = vand.u32 4294901760, %v4824_v39 }
 0x724   :  { %7185 = vmatpush3.bf16.msra.mxu1 %v7184_v27  ;;  %4634 = vmatprep.mubr.f32.mxu0 %v4633_v8  ;;  %v4804_v27 = vand.u32 4294901760, %v4803_v13  ;;  %v4718_v8 = vand.u32 4294901760, %v8866_v50  ;;  %v7198_v34 = vpack.c.bf16 %v4837_v11, %v4830_v25 }
 0x725   :  { %4640 = vmatmul.mubr.f32.vlgmr.msra.gmra.mrb[8].mxu0 %v4639_v1  ;;  %7187 = vmatprep.subr.bf16.mxu1 %v7186_v53  ;;  %v7192_v53 = vpack.c.bf16 %v4697_v42, %v4690_v56  ;;  %v4818_v26 = vand.u32 4294901760, %v4817_v35  ;;  %v4831_v56 = vsub.f32 %v8860_v45, %v4830_v25  ;;  %v4838_v42 = vsub.f32 %v8862_v61, %v4837_v11 }
 0x726   :  { %7085 = vmatpush3.bf16.msra.mxu0 %v7084_v18  ;;  %4870 = vmatprep.mubr.f32.mxu0 %v8952_v5  ;;  %v4692_v18 = vand.u32 4294901760, %v4691_v22  ;;  %v7094_v19 = vpack.c.bf16 %v4811_v16, %v4804_v27  ;;  %v4706_v59 = vand.u32 4294901760, %v4705_v46  ;;  %v4713_v1 = vand.u32 4294901760, %v4712_v58  ;;  %v5435_v22 = vld [vmem:[%s9078_s7] ss:$0 sm:$0xff]  ;;  %s7329_s7 = scalar_lea.vmem %s5404_s22, 32 }
 0x727   :  { %7087 = vmatprep.subr.bf16.mxu0 %v7086_v52  ;;  %v4719_v30 = vsub.f32 %v8866_v50, %v4718_v8  ;;  %v4726_v52 = vsub.f32 %v8868_v43, %v4725_v14  ;;  %v7098_v45 = vpack.c.bf16 %v4825_v6, %v4818_v26  ;;  %v4832_v49 = vand.u32 4294901760, %v4831_v56  ;;  %v9216_v43 = vld [vmem:[#allocation14_spill] sm:$0xff]  ;;  %p7330_p0 = scmp.ne.s32.totalorder %s5404_s22, %s7329_s7  ;;  %p7335_p2 = scmp.lt.s32.totalorder %s7329_s7, %s7329_s7 }
 0x728   :  { %7189 = vmatpush3.bf16.msra.mxu1 %v7188_v2  ;;  %v7096_v13 = vpack.c.bf16 %v4699_v51, %v4692_v18  ;;  %v4839_v61 = vand.u32 4294901760, %v4838_v42  ;;  %v7200_v48 = vpack.c.bf16 %v4725_v14, %v4718_v8  ;;  %v7100_v2 = vpack.c.bf16 %v4713_v1, %v4706_v59 }
 0x729   :  { %7191 = vmatprep.subr.bf16.mxu1 %v7190_v31  ;;  %v4720_v31 = vand.u32 4294901760, %v4719_v30  ;;  %v4727_v63 = vand.u32 4294901760, %v4726_v52  ;;  %p7336_p3 = por %p7335_p2, %p7334_p1 }
 0x72a   :  { %7089 = vmatpush3.bf16.msra.mxu0 %v7088_v33  ;;  %v7102_v38 = vpack.c.bf16 %v4839_v61, %v4832_v49 }
 0x72b   :  { %7091 = vmatprep.subr.bf16.mxu0 %v7090_v12  ;;  %v7104_v50 = vpack.c.bf16 %v4727_v63, %v4720_v31  ;;  %p7337_p4 = pnand %p7336_p3, %p7330_p0 }
 0x72c   :  { %7193 = vmatpush3.bf16.msra.mxu1 %v7192_v53 }
 0x72d   :  { %7195 = vmatprep.subr.bf16.mxu1 %v7194_v55 }
 0x72e   :  { %7093 = vmatpush3.bf16.msra.mxu0 %v7092_v15 }
 0x72f   :  { %7095 = vmatprep.subr.bf16.mxu0 %v7094_v19 }
 0x730   :  { %7197 = vmatpush3.bf16.msra.mxu1 %v7196_v40 }
 0x731   :  { %7199 = vmatprep.subr.bf16.mxu1 %v7198_v34 }
 0x732   :  { %7097 = vmatpush3.bf16.msra.mxu0 %v7096_v13 }
 0x733   :  { %7099 = vmatprep.subr.bf16.mxu0 %v7098_v45 }
 0x734   :  { %7201 = vmatpush3.bf16.msra.mxu1 %v7200_v48 }
 0x735   :  { %7203 = vmatprep.subr.bf16.mxu1 %v8924_v23  ;;  %v9217_v23 = vld [vmem:[#allocation16_spill] sm:$0xff] }
 0x736   :  { %7101 = vmatpush3.bf16.msra.mxu0 %v7100_v2 }
 0x737   :  { %7103 = vmatprep.subr.bf16.mxu0 %v7102_v38 }
 0x738   :  { %7205 = vmatpush3.bf16.msra.mxu1 %v8926_v29  ;;  %v9219_v29 = vld [vmem:[#allocation21_spill] sm:$0xff] }
 0x739   :  { %7207 = vmatprep.subr.bf16.mxu1 %v8928_v62  ;;  %v9220_v62 = vld [vmem:[#allocation24_spill] sm:$0xff] }
 0x73a   :  { %7105 = vmatpush3.bf16.msra.mxu0 %v7104_v50 }
 0x73b   :  { %7107 = vmatprep.subr.bf16.mxu0 %v8932_v60  ;;  %v9218_v60 = vld [vmem:[#allocation18_spill] sm:$0xff] }
 0x73c   :  { %7209 = vmatpush3.bf16.msra.mxu1 %v8930_v3  ;;  %v9221_v3 = vld [vmem:[#allocation5_spill] sm:$0xff] }
 0x73e   :  { %7109 = vmatpush3.bf16.msra.mxu0 %v8934_v0  ;;  %v9222_v0 = vld [vmem:[#allocation6_spill] sm:$0xff] }
 0x73f   :  { %5286 = vmatmul.mubr.f32.vlgmr.msra.gmra.mrb[12].mxu1 %v8950_v36  ;;  %7111 = vmatprep.subr.bf16.mxu0 %v8936_v54  ;;  %v9223_v54 = vld [vmem:[#allocation7_spill] sm:$0xff] }
 0x742   :  { %7113 = vmatpush3.bf16.msra.mxu0 %v8938_v32  ;;  %v9224_v32 = vld [vmem:[#allocation8_spill] sm:$0xff] }
 0x743   :  { %7147 = vmatprep.subr.bf16.mxu0 %v9216_v43 }
 0x745   :  { %4872 = vmatmul.mubr.f32.vlgmr.msra.gmra.mrb[10].mxu0 %v8950_v36 }
 0x746   :  { %7149 = vmatpush3.bf16.msra.mxu0 %v9217_v23  ;;  %5114 = vmatprep.mubr.f32.mxu0 %v4631_v10  ;;  %v9226_v10 = vld [vmem:[#allocation10_spill] sm:$0xff] }
 0x747   :  { %7151 = vmatprep.subr.bf16.mxu0 %v9218_v60 }
 0x74a   :  { %7153 = vmatpush3.bf16.msra.mxu0 %v9219_v29 }
 0x74b   :  { %7155 = vmatprep.subr.bf16.mxu0 %v8732_v21 }
 0x74e   :  { %7157 = vmatpush3.bf16.msra.mxu0 %v8744_v41 }
 0x74f   :  { %7159 = vmatprep.subr.bf16.mxu0 %v8750_v9 }
 0x752   :  { %7161 = vmatpush3.bf16.msra.mxu0 %v8757_v20 }
 0x753   :  { %7163 = vmatprep.subr.bf16.mxu0 %v8762_v44 }
 0x756   :  { %7165 = vmatpush3.bf16.msra.mxu0 %v9220_v62 }
 0x757   :  { %7167 = vmatprep.subr.bf16.mxu0 %v9221_v3 }
 0x75a   :  { %7169 = vmatpush3.bf16.msra.mxu0 %v9222_v0 }
 0x75b   :  { %7171 = vmatprep.subr.bf16.mxu0 %v9223_v54 }
 0x75e   :  { %7173 = vmatpush3.bf16.msra.mxu0 %v9224_v32 }
 0x75f   :  { %7175 = vmatprep.subr.bf16.mxu0 %v9225_v7 }
 0x762   :  { %7177 = vmatpush3.bf16.msra.mxu0 %v9226_v10 }
 0x763   :  { %7211 = vmatprep.subr.bf16.mxu0 %v9216_v43 }
 0x765   :  { %5118 = vmatmul.mubr.f32.vlgmr.msra.gmra.mrb[12].mxu0 %v4637_v17 }
 0x766   :  { %7213 = vmatpush3.bf16.msra.mxu0 %v9217_v23  ;;  %5388 = vmatprep.mubr.f32.mxu0 %v8952_v5 }
 0x767   :  { %7215 = vmatprep.subr.bf16.mxu0 %v9218_v60 }
 0x76a   :  { %7217 = vmatpush3.bf16.msra.mxu0 %v9219_v29 }
 0x76b   :  { %7219 = vmatprep.subr.bf16.mxu0 %v8732_v21 }
 0x76e   :  { %7221 = vmatpush3.bf16.msra.mxu0 %v8744_v41 }
 0x76f   :  { %7223 = vmatprep.subr.bf16.mxu0 %v8750_v9 }
 0x772   :  { %7225 = vmatpush3.bf16.msra.mxu0 %v8757_v20 }
 0x773   :  { %7227 = vmatprep.subr.bf16.mxu0 %v8762_v44 }
 0x776   :  { %7229 = vmatpush3.bf16.msra.mxu0 %v9220_v62 }
 0x777   :  { %7231 = vmatprep.subr.bf16.mxu0 %v9221_v3 }
 0x77a   :  { %7233 = vmatpush3.bf16.msra.mxu0 %v9222_v0 }
 0x77b   :  { %7235 = vmatprep.subr.bf16.mxu0 %v9223_v54 }
 0x77e   :  { %7237 = vmatpush3.bf16.msra.mxu0 %v9224_v32 }
 0x77f   :  { %7239 = vmatprep.subr.bf16.mxu0 %v9225_v7 }
 0x782   :  { %7241 = vmatpush3.bf16.msra.mxu0 %v9226_v10 }
 0x785   :  { %5390 = vmatmul.mubr.f32.vlgmr.msra.gmra.mrb[14].mxu0 %v8950_v36 }
 0x7f2   :  { %v5826_v9 = vpop.f32.mrb[10].mxu1 }
 0x7f3   :  { %v5827_v21 = vpop.f32.mrb[11].mxu1 }
 0x7f4   :  { %v5828_v41 = vadd.f32 %v5827_v21, %v5826_v9 }
 0x7f8   :  { %v5756_v20 = vpop.f32.mrb[8].mxu0 }
 0x7f9   :  { %v5757_v44 = vpop.f32.mrb[9].mxu0 }
 0x7fa   :  { %v5758_v5 = vadd.f32 %v5757_v44, %v5756_v20 }
 0x7fc   :  { %v4642_v24 = vadd.f32 %v5758_v5, %v5435_v22 }
 0x812   :  { %v5896_v47 = vpop.f32.mrb[12].mxu1 }
 0x813   :  { %v5897_v17 = vpop.f32.mrb[13].mxu1 }
 0x814   :  { %v5898_v33 = vadd.f32 %v5897_v17, %v5896_v47 }
 0x818   :  { %v5791_v37 = vpop.f32.mrb[10].mxu0 }
 0x819   :  { %v5792_v28 = vpop.f32.mrb[11].mxu0 }
 0x81a   :  { %v5793_v27 = vadd.f32 %v5792_v28, %v5791_v37 }
 0x81c   :  { %v4874_v16 = vadd.f32 %v5793_v27, %v4642_v24 }
 0x81e   :  { %v5012_v12 = vadd.f32 %v5828_v41, %v4874_v16 }
 0x838   :  { %v5861_v36 = vpop.f32.mrb[12].mxu0 }
 0x839   :  { %v5862_v35 = vpop.f32.mrb[13].mxu0 }
 0x83a   :  { %v5863_v39 = vadd.f32 %v5862_v35, %v5861_v36 }
 0x83c   :  { %v5120_v53 = vadd.f32 %v5863_v39, %v5012_v12 }
 0x83e   :  { %v5288_v55 = vadd.f32 %v5898_v33, %v5120_v53 }
 0x858   :  { %v5931_v4 = vpop.f32.mrb[14].mxu0 }
 0x859   :  { %v5932_v57 = vpop.f32.mrb[15].mxu0 }
 0x85a   :  { %v5933_v18 = vadd.f32 %v5932_v57, %v5931_v4 }
 0x85c   :  { %v5392_v51 = vadd.f32 %v5933_v18, %v5288_v55 }
 0x85e   :  { %5396 = vst.msk [vmem:[#allocation2] sm:$0x3] %vm5395_vm4, %v5392_v51 }
 0x85f   :  { %7340 = shalt.err (!%p7337_p4)
}
 0x860   :  { %s7341_s1 = scalar_lea.hbm %s9079_s8, 32 }
 0x861   :  { %p7342_p5 = scmp.ne.s32.totalorder %s9079_s8, %s7341_s1  ;;  %p7345_p6 = scmp.lt.u32.totalorder %s7341_s1, %s9079_s8 }
 0x863   :  { %p7347_p7 = pnand %p7345_p6, %p7342_p5 }
 0x865   :  { %7350 = shalt.err (!%p7347_p7)
}
 0x866   :  { %5406 = dma.vmem_to_hbm [thread:$0]  %s5404_s22, 32, %s9079_s8, [#allocation3]  }
 0x867   :  { %7351 = dma.done.wait [#allocation3], 32  }
 0x868   :  { %7352 = vsyncadd [#allocation3], 4294967264 }
 0x869   :  { %5410 = vsyncpa [#allocation3], 1 }

</bundles_post_ra>
